<compile_context>
chip_gen: v7x
topology: tpu7x:2x2x1
jax: 0.10.0
libtpu: 0.0.40
codegen_flags: <defaults>
</compile_context>

<pallas_src>
import jax
import jax.numpy as jnp
from jax.experimental import pallas as pl
from jax.experimental.pallas import tpu as pltpu

# ----------------------------- config ---------------------------------------
NUM_OBS_HISTORY = 48          # num_obs_history
NUM_PRIVILEGED = 16           # num_privileged_obs
NUM_ACTIONS = 12              # num_actions
ADAPT_HIDDEN = [256, 128]     # adaptation_module_branch_hidden_dims
ACTOR_HIDDEN = [512, 256, 128]
CRITIC_HIDDEN = [512, 256, 128]
INIT_NOISE_STD = 1.0
BATCH = 8
LANES = 128                   # lane-dense output width


# ----------------------------- fused kernel ----------------------------------
def fused_ac_kernel(obs_ref, priv_ref,
                    aw0, ab0, aw1, ab1, aw2p, ab2p,            # adaptation module (VMEM)
                    a_eb, a_bb0, a_bb1,                        # actor biases (VMEM)
                    c_eb, c_bb0, c_bb1,                        # critic biases (VMEM)
                    head_b,                                    # fused head bias (VMEM)
                    enc_obs_w_hbm, a_ew_latp_hbm, c_ew_priv_hbm,
                    a_bw0_hbm, a_bw1_hbm, c_bw0_hbm, c_bw1_hbm,
                    head_w_hbm,                                # heavy weights (HBM / pl.ANY)
                    out_ref,                                   # (2, B, 128) f32 slab
                    enc_obs_w_v, a_ew_latp_v, c_ew_priv_v,
                    a_bw0_v, a_bw1_v, c_bw0_v, c_bw1_v,
                    head_w_v,                                  # VMEM scratch for the above
                    dma_sems):                                 # DMA semaphores (8,)
    f32 = jnp.float32
    bf16 = jnp.bfloat16

    # --- kick off HBM->VMEM copies of the heavy actor/critic weights NOW so
    # they stream in while the adaptation MLP runs (weights were the exposed
    # DMA cost before the first matmul in the previous version).
    hbm_srcs = (enc_obs_w_hbm, a_ew_latp_hbm, c_ew_priv_hbm,
                a_bw0_hbm, a_bw1_hbm, c_bw0_hbm, c_bw1_hbm, head_w_hbm)
    vmem_dsts = (enc_obs_w_v, a_ew_latp_v, c_ew_priv_v,
                 a_bw0_v, a_bw1_v, c_bw0_v, c_bw1_v, head_w_v)
    copies = []
    for i, (src, dst) in enumerate(zip(hbm_srcs, vmem_dsts)):
        cp = pltpu.make_async_copy(src, dst, dma_sems.at[i])
        cp.start()
        copies.append(cp)
    (enc_cp, alat_cp, cpriv_cp,
     abw0_cp, abw1_cp, cbw0_cp, cbw1_cp, head_cp) = copies

    def elu(x):                       # f32; clamp so discarded branch never infs
        return jnp.where(x > 0, x, jnp.exp(jnp.minimum(x, 0.0)) - 1.0)

    def dense(x_bf, w_ref, b_ref):    # bf16 operands, f32 accumulate + f32 bias
        return jnp.dot(x_bf, w_ref[...], preferred_element_type=f32) + b_ref[...]

    obs = obs_ref[...].astype(bf16)
    priv = priv_ref[...].astype(bf16)

    # ---- adaptation module: Lin -> ELU -> Lin -> ELU -> Lin (overlaps DMAs) --
    h = elu(dense(obs, aw0, ab0)).astype(bf16)
    h = elu(dense(h, aw1, ab1)).astype(bf16)
    latent_pad = dense(h, aw2p, ab2p)          # (B,128) f32, cols >=16 are zero
    out_ref[0] = latent_pad                    # lane-dense unmasked store
    lat_bf = latent_pad.astype(bf16)
    # NOTE: the returned latent is the f32 pre-cast value; the actor consumes
    # the bf16-rounded latent (identical in the PyTorch model, negligible here).

    # ---- fused obs-side encoder: one [48,1024] matmul, 128-aligned slice ------
    enc_cp.wait()
    obs_enc = jnp.dot(obs, enc_obs_w_v[...], preferred_element_type=f32)

    # ---- actor body on cat(obs, latent): obs_enc_actor + l_pad@W_lat_pad + b --
    alat_cp.wait()
    h_a = elu(obs_enc[:, :ACTOR_HIDDEN[0]]
              + jnp.dot(lat_bf, a_ew_latp_v[...], preferred_element_type=f32)
              + a_eb[...]).astype(bf16)
    abw0_cp.wait()
    h_a = elu(dense(h_a, a_bw0_v, a_bb0)).astype(bf16)
    abw1_cp.wait()
    h_a = elu(dense(h_a, a_bw1_v, a_bb1)).astype(bf16)

    # ---- critic body on cat(obs, privileged_obs) ------------------------------
    cpriv_cp.wait()
    h_c = elu(obs_enc[:, ACTOR_HIDDEN[0]:]
              + jnp.dot(priv, c_ew_priv_v[...], preferred_element_type=f32)
              + c_eb[...]).astype(bf16)
    cbw0_cp.wait()
    h_c = elu(dense(h_c, c_bw0_v, c_bb0)).astype(bf16)
    cbw1_cp.wait()
    h_c = elu(dense(h_c, c_bw1_v, c_bb1)).astype(bf16)

    # ---- fused block-diagonal output head: one matmul, one lane-dense store ---
    head_cp.wait()
    hc = jnp.concatenate([h_a, h_c], axis=-1)  # (B,256) bf16, 128-aligned concat
    out_ref[1] = dense(hc, head_w_v, head_b)   # cols 0:12 = actions, col 12 = value


# ----------------------------- param init ------------------------------------
def _linear_params(key, fan_in, fan_out):
    # deterministic synthetic init (kaiming-uniform-ish); layout [in, out]
    kw, kb = jax.random.split(key)
    bound = 1.0 / jnp.sqrt(jnp.float32(fan_in))
    w = jax.random.uniform(kw, (fan_in, fan_out), jnp.float32, -bound, bound)
    b = jax.random.uniform(kb, (1, fan_out), jnp.float32, -bound, bound)
    return w, b


def init_params(key):
    keys = jax.random.split(key, 11)
    p = {}
    # adaptation module: noh -> 256 -> 128 -> npo
    p["aw0"], p["ab0"] = _linear_params(keys[0], NUM_OBS_HISTORY, ADAPT_HIDDEN[0])
    p["aw1"], p["ab1"] = _linear_params(keys[1], ADAPT_HIDDEN[0], ADAPT_HIDDEN[1])
    p["aw2"], p["ab2"] = _linear_params(keys[2], ADAPT_HIDDEN[1], NUM_PRIVILEGED)
    # actor: (noh + npo) -> 512 -> 256 -> 128 -> num_actions
    in_ac = NUM_OBS_HISTORY + NUM_PRIVILEGED
    p["a_ew"], p["a_eb"] = _linear_params(keys[3], in_ac, ACTOR_HIDDEN[0])
    p["a_bw0"], p["a_bb0"] = _linear_params(keys[4], ACTOR_HIDDEN[0], ACTOR_HIDDEN[1])
    p["a_bw1"], p["a_bb1"] = _linear_params(keys[5], ACTOR_HIDDEN[1], ACTOR_HIDDEN[2])
    p["a_ow"], p["a_ob"] = _linear_params(keys[6], ACTOR_HIDDEN[2], NUM_ACTIONS)
    # critic: (noh + npo) -> 512 -> 256 -> 128 -> 1
    p["c_ew"], p["c_eb"] = _linear_params(keys[7], in_ac, CRITIC_HIDDEN[0])
    p["c_bw0"], p["c_bb0"] = _linear_params(keys[8], CRITIC_HIDDEN[0], CRITIC_HIDDEN[1])
    p["c_bw1"], p["c_bb1"] = _linear_params(keys[9], CRITIC_HIDDEN[1], CRITIC_HIDDEN[2])
    p["c_ow"], p["c_ob"] = _linear_params(keys[10], CRITIC_HIDDEN[2], 1)
    # std parameter (Normal distribution scale) -- elementwise, kept in plain JAX
    p["std"] = INIT_NOISE_STD * jnp.ones((NUM_ACTIONS,), jnp.float32)
    return p


def _pad_cols(w, total):
    return jnp.pad(w, ((0, 0), (0, total - w.shape[1])))


def _pad_rows(w, total):
    return jnp.pad(w, ((0, total - w.shape[0]), (0, 0)))


def prepare_kernel_params(p):
    """bf16 weights, f32 biases; fused obs encoder; fused padded output head."""
    bf = jnp.bfloat16
    kp = {}
    kp["aw0"] = p["aw0"].astype(bf);  kp["ab0"] = p["ab0"]
    kp["aw1"] = p["aw1"].astype(bf);  kp["ab1"] = p["ab1"]
    kp["aw2p"] = _pad_cols(p["aw2"], LANES).astype(bf)
    kp["ab2p"] = _pad_cols(p["ab2"], LANES)
    # fused obs-side encoder weight: actor cols 0:512, critic cols 512:1024
    kp["enc_obs_w"] = jnp.concatenate(
        [p["a_ew"][:NUM_OBS_HISTORY], p["c_ew"][:NUM_OBS_HISTORY]], axis=1).astype(bf)
    # actor encoder latent-half, zero-row-padded to 128 (feeds padded latent)
    kp["a_ew_latp"] = _pad_rows(p["a_ew"][NUM_OBS_HISTORY:], LANES).astype(bf)
    kp["a_eb"] = p["a_eb"]
    # critic encoder privileged-half
    kp["c_ew_priv"] = p["c_ew"][NUM_OBS_HISTORY:].astype(bf)
    kp["c_eb"] = p["c_eb"]
    kp["a_bw0"] = p["a_bw0"].astype(bf); kp["a_bb0"] = p["a_bb0"]
    kp["a_bw1"] = p["a_bw1"].astype(bf); kp["a_bb1"] = p["a_bb1"]
    kp["c_bw0"] = p["c_bw0"].astype(bf); kp["c_bb0"] = p["c_bb0"]
    kp["c_bw1"] = p["c_bw1"].astype(bf); kp["c_bb1"] = p["c_bb1"]
    # fused block-diagonal output head: rows 0:128 actor (cols 0:12),
    # rows 128:256 critic (col 12); bias packed the same way.
    head_w = jnp.zeros((ACTOR_HIDDEN[2] + CRITIC_HIDDEN[2], LANES), jnp.float32)
    head_w = head_w.at[:ACTOR_HIDDEN[2], :NUM_ACTIONS].set(p["a_ow"])
    head_w = head_w.at[ACTOR_HIDDEN[2]:, NUM_ACTIONS:NUM_ACTIONS + 1].set(p["c_ow"])
    kp["head_w"] = head_w.astype(bf)
    head_b = jnp.zeros((1, LANES), jnp.float32)
    head_b = head_b.at[:, :NUM_ACTIONS].set(p["a_ob"])
    head_b = head_b.at[:, NUM_ACTIONS:NUM_ACTIONS + 1].set(p["c_ob"])
    kp["head_b"] = head_b
    return kp


# small params: auto-DMA'd into VMEM
_VMEM_ARGS = ("aw0", "ab0", "aw1", "ab1", "aw2p", "ab2p",
              "a_eb", "a_bb0", "a_bb1",
              "c_eb", "c_bb0", "c_bb1",
              "head_b")
# heavy weights: stay in HBM (pl.ANY), manually copied inside the kernel
_HBM_ARGS = ("enc_obs_w", "a_ew_latp", "c_ew_priv",
             "a_bw0", "a_bw1", "c_bw0", "c_bw1", "head_w")

_VMEM = pl.BlockSpec(memory_space=pltpu.MemorySpace.VMEM)
_ANY = pl.BlockSpec(memory_space=pl.ANY)


# ----------------------------- fused wrapper ----------------------------------
def actor_critic_forward(kp, obs_history, privileged_obs):
    """Fused act_student + evaluate.

    Returns (latent [B,16], actions_mean [B,12], value [B,1]).
    """
    B = obs_history.shape[0]
    # pad batch to a multiple of 16 rows so bf16 casts fill (16,128) vreg tiles
    B_pad = ((B + 15) // 16) * 16
    obs_p = jnp.pad(obs_history, ((0, B_pad - B), (0, 0)))
    priv_p = jnp.pad(privileged_obs, ((0, B_pad - B), (0, 0)))

    args = ((obs_p, priv_p)
            + tuple(kp[k] for k in _VMEM_ARGS)
            + tuple(kp[k] for k in _HBM_ARGS))

    # advisory cost estimate so XLA can overlap this µs-scale call
    kn = (NUM_OBS_HISTORY * ADAPT_HIDDEN[0]
          + ADAPT_HIDDEN[0] * ADAPT_HIDDEN[1]
          + ADAPT_HIDDEN[1] * LANES
          + NUM_OBS_HISTORY * (ACTOR_HIDDEN[0] + CRITIC_HIDDEN[0])
          + LANES * ACTOR_HIDDEN[0]
          + NUM_PRIVILEGED * CRITIC_HIDDEN[0]
          + ACTOR_HIDDEN[0] * ACTOR_HIDDEN[1] + ACTOR_HIDDEN[1] * ACTOR_HIDDEN[2]
          + CRITIC_HIDDEN[0] * CRITIC_HIDDEN[1] + CRITIC_HIDDEN[1] * CRITIC_HIDDEN[2]
          + (ACTOR_HIDDEN[2] + CRITIC_HIDDEN[2]) * LANES)
    elu_elems = (ADAPT_HIDDEN[0] + ADAPT_HIDDEN[1]
                 + ACTOR_HIDDEN[0] + ACTOR_HIDDEN[1] + ACTOR_HIDDEN[2]
                 + CRITIC_HIDDEN[0] + CRITIC_HIDDEN[1] + CRITIC_HIDDEN[2])
    bytes_accessed = (sum(int(a.size) * a.dtype.itemsize for a in args)
                      + 2 * B_pad * LANES * 4)
    ce = pl.CostEstimate(flops=2 * B_pad * kn,
                         transcendentals=B_pad * elu_elems,
                         bytes_accessed=bytes_accessed)

    packed = pl.pallas_call(
        fused_ac_kernel,
        out_shape=jax.ShapeDtypeStruct((2, B_pad, LANES), jnp.float32),
        in_specs=[_VMEM] * (2 + len(_VMEM_ARGS)) + [_ANY] * len(_HBM_ARGS),
        out_specs=_VMEM,
        scratch_shapes=[pltpu.VMEM(kp[k].shape, jnp.bfloat16) for k in _HBM_ARGS]
                       + [pltpu.SemaphoreType.DMA((len(_HBM_ARGS),))],
        cost_estimate=ce,
    )(*args)

    latent = packed[0, :B, :NUM_PRIVILEGED]
    actions_mean = packed[1, :B, :NUM_ACTIONS]
    value = packed[1, :B, NUM_ACTIONS:NUM_ACTIONS + 1]
    return latent, actions_mean, value


# ----------------------------- pure-JAX reference -----------------------------
def _ref_forward(kp, obs, priv):
    """Mirrors the kernel's bf16-weight / f32-accumulate arithmetic.

    NOTE: this validates the kernel against the same bf16 rounding, not the
    fp32 PyTorch module; bf16 casting of obs/activations can drift ~1e-2 from
    torch (acceptable for RL inference), hence the loose tolerance below.
    """
    f32 = jnp.float32

    def q(x):                       # emulate the bf16 cast of operands
        return x.astype(jnp.bfloat16).astype(f32)

    def elu(x):
        return jnp.where(x > 0, x, jnp.exp(jnp.minimum(x, 0.0)) - 1.0)

    def dense(xq, w, b):
        return xq @ q(w) + b

    o = q(obs)
    p = q(priv)
    # adaptation module
    h = q(elu(dense(o, kp["aw0"], kp["ab0"])))
    h = q(elu(dense(h, kp["aw1"], kp["ab1"])))
    latent_pad = dense(h, kp["aw2p"], kp["ab2p"])
    lat = q(latent_pad)
    # fused obs encoder
    obs_enc = o @ q(kp["enc_obs_w"])
    # actor
    h_a = q(elu(obs_enc[:, :ACTOR_HIDDEN[0]] + lat @ q(kp["a_ew_latp"]) + kp["a_eb"]))
    h_a = q(elu(dense(h_a, kp["a_bw0"], kp["a_bb0"])))
    h_a = q(elu(dense(h_a, kp["a_bw1"], kp["a_bb1"])))
    # critic
    h_c = q(elu(obs_enc[:, ACTOR_HIDDEN[0]:] + p @ q(kp["c_ew_priv"]) + kp["c_eb"]))
    h_c = q(elu(dense(h_c, kp["c_bw0"], kp["c_bb0"])))
    h_c = q(elu(dense(h_c, kp["c_bw1"], kp["c_bb1"])))
    head = dense(jnp.concatenate([h_a, h_c], axis=-1), kp["head_w"], kp["head_b"])
    return (latent_pad[:, :NUM_PRIVILEGED],
            head[:, :NUM_ACTIONS],
            head[:, NUM_ACTIONS:NUM_ACTIONS + 1])


# ----------------------------- main -------------------------------------------
if __name__ == "__main__":
    key = jax.random.PRNGKey(0)
    kparam_key, ko, kpr = jax.random.split(key, 3)
    params = init_params(kparam_key)
    kparams = prepare_kernel_params(params)

    obs_history = jax.random.normal(ko, (BATCH, NUM_OBS_HISTORY), jnp.float32)
    privileged_obs = jax.random.normal(kpr, (BATCH, NUM_PRIVILEGED), jnp.float32)

    fwd = jax.jit(actor_critic_forward)
    latent, actions_mean, value = fwd(kparams, obs_history, privileged_obs)

    # distribution stats (Normal(mean, std)) — elementwise glue in plain JAX
    # TODO(synk): sampling / log_prob / entropy of torch.distributions.Normal
    # are host-side elementwise ops and are intentionally not in the kernel.
    action_std = jnp.broadcast_to(params["std"], actions_mean.shape)

    jax.block_until_ready((latent, actions_mean, value, action_std))

    # self-check against a pure-JAX reference mirroring the bf16 arithmetic
    ref_latent, ref_mean, ref_value = _ref_forward(kparams, obs_history, privileged_obs)
    assert jnp.allclose(latent, ref_latent, atol=1e-2, rtol=1e-2)
    assert jnp.allclose(actions_mean, ref_mean, atol=1e-2, rtol=1e-2)
    assert jnp.allclose(value, ref_value, atol=1e-2, rtol=1e-2)

    print("KERNEL_OK")
</pallas_src>

<mosaic_0001>
module attributes {stable_mosaic.version = 11 : i64} {
  func.func @fused_ac_kernel(%arg0: memref<16x48xf32, #tpu.memory_space<vmem>>, %arg1: memref<16x16xf32, #tpu.memory_space<vmem>>, %arg2: memref<48x256xbf16, #tpu.memory_space<vmem>>, %arg3: memref<1x256xf32, #tpu.memory_space<vmem>>, %arg4: memref<256x128xbf16, #tpu.memory_space<vmem>>, %arg5: memref<1x128xf32, #tpu.memory_space<vmem>>, %arg6: memref<128x128xbf16, #tpu.memory_space<vmem>>, %arg7: memref<1x128xf32, #tpu.memory_space<vmem>>, %arg8: memref<1x512xf32, #tpu.memory_space<vmem>>, %arg9: memref<1x256xf32, #tpu.memory_space<vmem>>, %arg10: memref<1x128xf32, #tpu.memory_space<vmem>>, %arg11: memref<1x512xf32, #tpu.memory_space<vmem>>, %arg12: memref<1x256xf32, #tpu.memory_space<vmem>>, %arg13: memref<1x128xf32, #tpu.memory_space<vmem>>, %arg14: memref<1x128xf32, #tpu.memory_space<vmem>>, %arg15: memref<48x1024xbf16, #tpu.memory_space<any>>, %arg16: memref<128x512xbf16, #tpu.memory_space<any>>, %arg17: memref<16x512xbf16, #tpu.memory_space<any>>, %arg18: memref<512x256xbf16, #tpu.memory_space<any>>, %arg19: memref<256x128xbf16, #tpu.memory_space<any>>, %arg20: memref<512x256xbf16, #tpu.memory_space<any>>, %arg21: memref<256x128xbf16, #tpu.memory_space<any>>, %arg22: memref<256x128xbf16, #tpu.memory_space<any>>, %arg23: memref<2x16x128xf32, #tpu.memory_space<vmem>>, %arg24: memref<48x1024xbf16, #tpu.memory_space<vmem>>, %arg25: memref<128x512xbf16, #tpu.memory_space<vmem>>, %arg26: memref<16x512xbf16, #tpu.memory_space<vmem>>, %arg27: memref<512x256xbf16, #tpu.memory_space<vmem>>, %arg28: memref<256x128xbf16, #tpu.memory_space<vmem>>, %arg29: memref<512x256xbf16, #tpu.memory_space<vmem>>, %arg30: memref<256x128xbf16, #tpu.memory_space<vmem>>, %arg31: memref<256x128xbf16, #tpu.memory_space<vmem>>, %arg32: memref<8x!tpu.dma_semaphore, #tpu.memory_space<semaphore_mem>>) attributes {dimension_semantics = [], scalar_prefetch = 0 : i64, scratch_operands = 9 : i64, tpu.core_type = #tpu.core_type<tc>} {
    %c0_i32 = arith.constant 0 : i32
    %0 = tpu.memref_slice %arg32[%c0_i32] : memref<8x!tpu.dma_semaphore, #tpu.memory_space<semaphore_mem>> -> memref<1x!tpu.dma_semaphore, #tpu.memory_space<semaphore_mem>>
    %1 = tpu.memref_squeeze %0 : memref<1x!tpu.dma_semaphore, #tpu.memory_space<semaphore_mem>> -> memref<!tpu.dma_semaphore, #tpu.memory_space<semaphore_mem>>
    tpu.enqueue_dma source(%arg15 : memref<48x1024xbf16, #tpu.memory_space<any>>) target(%arg24 : memref<48x1024xbf16, #tpu.memory_space<vmem>>) target_semaphore(%1 : memref<!tpu.dma_semaphore, #tpu.memory_space<semaphore_mem>>)
    %c1_i32 = arith.constant 1 : i32
    %2 = tpu.memref_slice %arg32[%c1_i32] : memref<8x!tpu.dma_semaphore, #tpu.memory_space<semaphore_mem>> -> memref<1x!tpu.dma_semaphore, #tpu.memory_space<semaphore_mem>>
    %3 = tpu.memref_squeeze %2 : memref<1x!tpu.dma_semaphore, #tpu.memory_space<semaphore_mem>> -> memref<!tpu.dma_semaphore, #tpu.memory_space<semaphore_mem>>
    tpu.enqueue_dma source(%arg16 : memref<128x512xbf16, #tpu.memory_space<any>>) target(%arg25 : memref<128x512xbf16, #tpu.memory_space<vmem>>) target_semaphore(%3 : memref<!tpu.dma_semaphore, #tpu.memory_space<semaphore_mem>>)
    %c2_i32 = arith.constant 2 : i32
    %4 = tpu.memref_slice %arg32[%c2_i32] : memref<8x!tpu.dma_semaphore, #tpu.memory_space<semaphore_mem>> -> memref<1x!tpu.dma_semaphore, #tpu.memory_space<semaphore_mem>>
    %5 = tpu.memref_squeeze %4 : memref<1x!tpu.dma_semaphore, #tpu.memory_space<semaphore_mem>> -> memref<!tpu.dma_semaphore, #tpu.memory_space<semaphore_mem>>
    tpu.enqueue_dma source(%arg17 : memref<16x512xbf16, #tpu.memory_space<any>>) target(%arg26 : memref<16x512xbf16, #tpu.memory_space<vmem>>) target_semaphore(%5 : memref<!tpu.dma_semaphore, #tpu.memory_space<semaphore_mem>>)
    %c3_i32 = arith.constant 3 : i32
    %6 = tpu.memref_slice %arg32[%c3_i32] : memref<8x!tpu.dma_semaphore, #tpu.memory_space<semaphore_mem>> -> memref<1x!tpu.dma_semaphore, #tpu.memory_space<semaphore_mem>>
    %7 = tpu.memref_squeeze %6 : memref<1x!tpu.dma_semaphore, #tpu.memory_space<semaphore_mem>> -> memref<!tpu.dma_semaphore, #tpu.memory_space<semaphore_mem>>
    tpu.enqueue_dma source(%arg18 : memref<512x256xbf16, #tpu.memory_space<any>>) target(%arg27 : memref<512x256xbf16, #tpu.memory_space<vmem>>) target_semaphore(%7 : memref<!tpu.dma_semaphore, #tpu.memory_space<semaphore_mem>>)
    %c4_i32 = arith.constant 4 : i32
    %8 = tpu.memref_slice %arg32[%c4_i32] : memref<8x!tpu.dma_semaphore, #tpu.memory_space<semaphore_mem>> -> memref<1x!tpu.dma_semaphore, #tpu.memory_space<semaphore_mem>>
    %9 = tpu.memref_squeeze %8 : memref<1x!tpu.dma_semaphore, #tpu.memory_space<semaphore_mem>> -> memref<!tpu.dma_semaphore, #tpu.memory_space<semaphore_mem>>
    tpu.enqueue_dma source(%arg19 : memref<256x128xbf16, #tpu.memory_space<any>>) target(%arg28 : memref<256x128xbf16, #tpu.memory_space<vmem>>) target_semaphore(%9 : memref<!tpu.dma_semaphore, #tpu.memory_space<semaphore_mem>>)
    %c5_i32 = arith.constant 5 : i32
    %10 = tpu.memref_slice %arg32[%c5_i32] : memref<8x!tpu.dma_semaphore, #tpu.memory_space<semaphore_mem>> -> memref<1x!tpu.dma_semaphore, #tpu.memory_space<semaphore_mem>>
    %11 = tpu.memref_squeeze %10 : memref<1x!tpu.dma_semaphore, #tpu.memory_space<semaphore_mem>> -> memref<!tpu.dma_semaphore, #tpu.memory_space<semaphore_mem>>
    tpu.enqueue_dma source(%arg20 : memref<512x256xbf16, #tpu.memory_space<any>>) target(%arg29 : memref<512x256xbf16, #tpu.memory_space<vmem>>) target_semaphore(%11 : memref<!tpu.dma_semaphore, #tpu.memory_space<semaphore_mem>>)
    %c6_i32 = arith.constant 6 : i32
    %12 = tpu.memref_slice %arg32[%c6_i32] : memref<8x!tpu.dma_semaphore, #tpu.memory_space<semaphore_mem>> -> memref<1x!tpu.dma_semaphore, #tpu.memory_space<semaphore_mem>>
    %13 = tpu.memref_squeeze %12 : memref<1x!tpu.dma_semaphore, #tpu.memory_space<semaphore_mem>> -> memref<!tpu.dma_semaphore, #tpu.memory_space<semaphore_mem>>
    tpu.enqueue_dma source(%arg21 : memref<256x128xbf16, #tpu.memory_space<any>>) target(%arg30 : memref<256x128xbf16, #tpu.memory_space<vmem>>) target_semaphore(%13 : memref<!tpu.dma_semaphore, #tpu.memory_space<semaphore_mem>>)
    %c7_i32 = arith.constant 7 : i32
    %14 = tpu.memref_slice %arg32[%c7_i32] : memref<8x!tpu.dma_semaphore, #tpu.memory_space<semaphore_mem>> -> memref<1x!tpu.dma_semaphore, #tpu.memory_space<semaphore_mem>>
    %15 = tpu.memref_squeeze %14 : memref<1x!tpu.dma_semaphore, #tpu.memory_space<semaphore_mem>> -> memref<!tpu.dma_semaphore, #tpu.memory_space<semaphore_mem>>
    tpu.enqueue_dma source(%arg22 : memref<256x128xbf16, #tpu.memory_space<any>>) target(%arg31 : memref<256x128xbf16, #tpu.memory_space<vmem>>) target_semaphore(%15 : memref<!tpu.dma_semaphore, #tpu.memory_space<semaphore_mem>>)
    %c0 = arith.constant 0 : index
    %c0_0 = arith.constant 0 : index
    %16 = vector.load %arg0[%c0, %c0_0] : memref<16x48xf32, #tpu.memory_space<vmem>>, vector<16x48xf32>
    %17 = arith.truncf %16 : vector<16x48xf32> to vector<16x48xbf16>
    %c0_1 = arith.constant 0 : index
    %c0_2 = arith.constant 0 : index
    %18 = vector.load %arg1[%c0_1, %c0_2] : memref<16x16xf32, #tpu.memory_space<vmem>>, vector<16x16xf32>
    %19 = arith.truncf %18 : vector<16x16xf32> to vector<16x16xbf16>
    %c0_3 = arith.constant 0 : index
    %c0_4 = arith.constant 0 : index
    %20 = vector.load %arg2[%c0_3, %c0_4] : memref<48x256xbf16, #tpu.memory_space<vmem>>, vector<48x256xbf16>
    %cst = arith.constant dense<0.000000e+00> : vector<16x256xf32>
    %21 = tpu.matmul %17, %20, %cst {dimension_numbers = #tpu.dot_dimension_numbers<[1], [0], [0], [1], [0, 0, 1, 1], [], []>} : vector<16x48xbf16>, vector<48x256xbf16>, vector<16x256xf32> -> vector<16x256xf32>
    %c0_5 = arith.constant 0 : index
    %c0_6 = arith.constant 0 : index
    %22 = vector.load %arg3[%c0_5, %c0_6] : memref<1x256xf32, #tpu.memory_space<vmem>>, vector<1x256xf32>
    %23 = vector.broadcast %22 : vector<1x256xf32> to vector<16x256xf32>
    %24 = arith.addf %21, %23 : vector<16x256xf32>
    %cst_7 = arith.constant 0.000000e+00 : f32
    %25 = vector.broadcast %cst_7 : f32 to vector<16x256xf32>
    %26 = arith.cmpf ogt, %24, %25 : vector<16x256xf32>
    %cst_8 = arith.constant 0.000000e+00 : f32
    %27 = vector.broadcast %cst_8 : f32 to vector<16x256xf32>
    %28 = arith.minimumf %24, %27 : vector<16x256xf32>
    %29 = math.exp %28 : vector<16x256xf32>
    %cst_9 = arith.constant 1.000000e+00 : f32
    %30 = vector.broadcast %cst_9 : f32 to vector<16x256xf32>
    %31 = arith.subf %29, %30 : vector<16x256xf32>
    %32 = arith.select %26, %24, %31 : vector<16x256xi1>, vector<16x256xf32>
    %33 = arith.truncf %32 : vector<16x256xf32> to vector<16x256xbf16>
    %c0_10 = arith.constant 0 : index
    %c0_11 = arith.constant 0 : index
    %34 = vector.load %arg4[%c0_10, %c0_11] : memref<256x128xbf16, #tpu.memory_space<vmem>>, vector<256x128xbf16>
    %cst_12 = arith.constant dense<0.000000e+00> : vector<16x128xf32>
    %35 = tpu.matmul %33, %34, %cst_12 {dimension_numbers = #tpu.dot_dimension_numbers<[1], [0], [0], [1], [0, 0, 1, 1], [], []>} : vector<16x256xbf16>, vector<256x128xbf16>, vector<16x128xf32> -> vector<16x128xf32>
    %c0_13 = arith.constant 0 : index
    %c0_14 = arith.constant 0 : index
    %36 = vector.load %arg5[%c0_13, %c0_14] : memref<1x128xf32, #tpu.memory_space<vmem>>, vector<1x128xf32>
    %37 = vector.broadcast %36 : vector<1x128xf32> to vector<16x128xf32>
    %38 = arith.addf %35, %37 : vector<16x128xf32>
    %cst_15 = arith.constant 0.000000e+00 : f32
    %39 = vector.broadcast %cst_15 : f32 to vector<16x128xf32>
    %40 = arith.cmpf ogt, %38, %39 : vector<16x128xf32>
    %cst_16 = arith.constant 0.000000e+00 : f32
    %41 = vector.broadcast %cst_16 : f32 to vector<16x128xf32>
    %42 = arith.minimumf %38, %41 : vector<16x128xf32>
    %43 = math.exp %42 : vector<16x128xf32>
    %cst_17 = arith.constant 1.000000e+00 : f32
    %44 = vector.broadcast %cst_17 : f32 to vector<16x128xf32>
    %45 = arith.subf %43, %44 : vector<16x128xf32>
    %46 = arith.select %40, %38, %45 : vector<16x128xi1>, vector<16x128xf32>
    %47 = arith.truncf %46 : vector<16x128xf32> to vector<16x128xbf16>
    %c0_18 = arith.constant 0 : index
    %c0_19 = arith.constant 0 : index
    %48 = vector.load %arg6[%c0_18, %c0_19] : memref<128x128xbf16, #tpu.memory_space<vmem>>, vector<128x128xbf16>
    %cst_20 = arith.constant dense<0.000000e+00> : vector<16x128xf32>
    %49 = tpu.matmul %47, %48, %cst_20 {dimension_numbers = #tpu.dot_dimension_numbers<[1], [0], [0], [1], [0, 0, 1, 1], [], []>} : vector<16x128xbf16>, vector<128x128xbf16>, vector<16x128xf32> -> vector<16x128xf32>
    %c0_21 = arith.constant 0 : index
    %c0_22 = arith.constant 0 : index
    %50 = vector.load %arg7[%c0_21, %c0_22] : memref<1x128xf32, #tpu.memory_space<vmem>>, vector<1x128xf32>
    %51 = vector.broadcast %50 : vector<1x128xf32> to vector<16x128xf32>
    %52 = arith.addf %49, %51 : vector<16x128xf32>
    %c0_23 = arith.constant 0 : index
    %c0_24 = arith.constant 0 : index
    %c0_25 = arith.constant 0 : index
    %53 = vector.load %arg23[%c0_23, %c0_24, %c0_25] : memref<2x16x128xf32, #tpu.memory_space<vmem>>, vector<1x16x128xf32>
    %54 = vector.shape_cast %53 : vector<1x16x128xf32> to vector<16x128xf32>
    %55 = vector.shape_cast %52 : vector<16x128xf32> to vector<1x16x128xf32>
    tpu.vector_store %arg23[%c0_23, %c0_24, %c0_25], %55 {strides = array<i32>} : memref<2x16x128xf32, #tpu.memory_space<vmem>>, vector<1x16x128xf32>,
    %56 = arith.truncf %52 : vector<16x128xf32> to vector<16x128xbf16>
    %c0_i32_26 = arith.constant 0 : i32
    %57 = tpu.memref_slice %arg32[%c0_i32_26] : memref<8x!tpu.dma_semaphore, #tpu.memory_space<semaphore_mem>> -> memref<1x!tpu.dma_semaphore, #tpu.memory_space<semaphore_mem>>
    %58 = tpu.memref_squeeze %57 : memref<1x!tpu.dma_semaphore, #tpu.memory_space<semaphore_mem>> -> memref<!tpu.dma_semaphore, #tpu.memory_space<semaphore_mem>>
    tpu.wait_dma2 semaphore(%58 : memref<!tpu.dma_semaphore, #tpu.memory_space<semaphore_mem>>) src(%arg15 : memref<48x1024xbf16, #tpu.memory_space<any>>) dst(%arg24 : memref<48x1024xbf16, #tpu.memory_space<vmem>>)
    %c0_27 = arith.constant 0 : index
    %c0_28 = arith.constant 0 : index
    %59 = vector.load %arg24[%c0_27, %c0_28] : memref<48x1024xbf16, #tpu.memory_space<vmem>>, vector<48x1024xbf16>
    %cst_29 = arith.constant dense<0.000000e+00> : vector<16x1024xf32>
    %60 = tpu.matmul %17, %59, %cst_29 {dimension_numbers = #tpu.dot_dimension_numbers<[1], [0], [0], [1], [0, 0, 1, 1], [], []>} : vector<16x48xbf16>, vector<48x1024xbf16>, vector<16x1024xf32> -> vector<16x1024xf32>
    %c1_i32_30 = arith.constant 1 : i32
    %61 = tpu.memref_slice %arg32[%c1_i32_30] : memref<8x!tpu.dma_semaphore, #tpu.memory_space<semaphore_mem>> -> memref<1x!tpu.dma_semaphore, #tpu.memory_space<semaphore_mem>>
    %62 = tpu.memref_squeeze %61 : memref<1x!tpu.dma_semaphore, #tpu.memory_space<semaphore_mem>> -> memref<!tpu.dma_semaphore, #tpu.memory_space<semaphore_mem>>
    tpu.wait_dma2 semaphore(%62 : memref<!tpu.dma_semaphore, #tpu.memory_space<semaphore_mem>>) src(%arg16 : memref<128x512xbf16, #tpu.memory_space<any>>) dst(%arg25 : memref<128x512xbf16, #tpu.memory_space<vmem>>)
    %63 = vector.extract_strided_slice %60 {offsets = [0, 0], sizes = [16, 512], strides = [1, 1]} : vector<16x1024xf32> to vector<16x512xf32>
    %c0_31 = arith.constant 0 : index
    %c0_32 = arith.constant 0 : index
    %64 = vector.load %arg25[%c0_31, %c0_32] : memref<128x512xbf16, #tpu.memory_space<vmem>>, vector<128x512xbf16>
    %cst_33 = arith.constant dense<0.000000e+00> : vector<16x512xf32>
    %65 = tpu.matmul %56, %64, %cst_33 {dimension_numbers = #tpu.dot_dimension_numbers<[1], [0], [0], [1], [0, 0, 1, 1], [], []>} : vector<16x128xbf16>, vector<128x512xbf16>, vector<16x512xf32> -> vector<16x512xf32>
    %66 = arith.addf %63, %65 : vector<16x512xf32>
    %c0_34 = arith.constant 0 : index
    %c0_35 = arith.constant 0 : index
    %67 = vector.load %arg8[%c0_34, %c0_35] : memref<1x512xf32, #tpu.memory_space<vmem>>, vector<1x512xf32>
    %68 = vector.broadcast %67 : vector<1x512xf32> to vector<16x512xf32>
    %69 = arith.addf %66, %68 : vector<16x512xf32>
    %cst_36 = arith.constant 0.000000e+00 : f32
    %70 = vector.broadcast %cst_36 : f32 to vector<16x512xf32>
    %71 = arith.cmpf ogt, %69, %70 : vector<16x512xf32>
    %cst_37 = arith.constant 0.000000e+00 : f32
    %72 = vector.broadcast %cst_37 : f32 to vector<16x512xf32>
    %73 = arith.minimumf %69, %72 : vector<16x512xf32>
    %74 = math.exp %73 : vector<16x512xf32>
    %cst_38 = arith.constant 1.000000e+00 : f32
    %75 = vector.broadcast %cst_38 : f32 to vector<16x512xf32>
    %76 = arith.subf %74, %75 : vector<16x512xf32>
    %77 = arith.select %71, %69, %76 : vector<16x512xi1>, vector<16x512xf32>
    %78 = arith.truncf %77 : vector<16x512xf32> to vector<16x512xbf16>
    %c3_i32_39 = arith.constant 3 : i32
    %79 = tpu.memref_slice %arg32[%c3_i32_39] : memref<8x!tpu.dma_semaphore, #tpu.memory_space<semaphore_mem>> -> memref<1x!tpu.dma_semaphore, #tpu.memory_space<semaphore_mem>>
    %80 = tpu.memref_squeeze %79 : memref<1x!tpu.dma_semaphore, #tpu.memory_space<semaphore_mem>> -> memref<!tpu.dma_semaphore, #tpu.memory_space<semaphore_mem>>
    tpu.wait_dma2 semaphore(%80 : memref<!tpu.dma_semaphore, #tpu.memory_space<semaphore_mem>>) src(%arg18 : memref<512x256xbf16, #tpu.memory_space<any>>) dst(%arg27 : memref<512x256xbf16, #tpu.memory_space<vmem>>)
    %c0_40 = arith.constant 0 : index
    %c0_41 = arith.constant 0 : index
    %81 = vector.load %arg27[%c0_40, %c0_41] : memref<512x256xbf16, #tpu.memory_space<vmem>>, vector<512x256xbf16>
    %cst_42 = arith.constant dense<0.000000e+00> : vector<16x256xf32>
    %82 = tpu.matmul %78, %81, %cst_42 {dimension_numbers = #tpu.dot_dimension_numbers<[1], [0], [0], [1], [0, 0, 1, 1], [], []>} : vector<16x512xbf16>, vector<512x256xbf16>, vector<16x256xf32> -> vector<16x256xf32>
    %c0_43 = arith.constant 0 : index
    %c0_44 = arith.constant 0 : index
    %83 = vector.load %arg9[%c0_43, %c0_44] : memref<1x256xf32, #tpu.memory_space<vmem>>, vector<1x256xf32>
    %84 = vector.broadcast %83 : vector<1x256xf32> to vector<16x256xf32>
    %85 = arith.addf %82, %84 : vector<16x256xf32>
    %cst_45 = arith.constant 0.000000e+00 : f32
    %86 = vector.broadcast %cst_45 : f32 to vector<16x256xf32>
    %87 = arith.cmpf ogt, %85, %86 : vector<16x256xf32>
    %cst_46 = arith.constant 0.000000e+00 : f32
    %88 = vector.broadcast %cst_46 : f32 to vector<16x256xf32>
    %89 = arith.minimumf %85, %88 : vector<16x256xf32>
    %90 = math.exp %89 : vector<16x256xf32>
    %cst_47 = arith.constant 1.000000e+00 : f32
    %91 = vector.broadcast %cst_47 : f32 to vector<16x256xf32>
    %92 = arith.subf %90, %91 : vector<16x256xf32>
    %93 = arith.select %87, %85, %92 : vector<16x256xi1>, vector<16x256xf32>
    %94 = arith.truncf %93 : vector<16x256xf32> to vector<16x256xbf16>
    %c4_i32_48 = arith.constant 4 : i32
    %95 = tpu.memref_slice %arg32[%c4_i32_48] : memref<8x!tpu.dma_semaphore, #tpu.memory_space<semaphore_mem>> -> memref<1x!tpu.dma_semaphore, #tpu.memory_space<semaphore_mem>>
    %96 = tpu.memref_squeeze %95 : memref<1x!tpu.dma_semaphore, #tpu.memory_space<semaphore_mem>> -> memref<!tpu.dma_semaphore, #tpu.memory_space<semaphore_mem>>
    tpu.wait_dma2 semaphore(%96 : memref<!tpu.dma_semaphore, #tpu.memory_space<semaphore_mem>>) src(%arg19 : memref<256x128xbf16, #tpu.memory_space<any>>) dst(%arg28 : memref<256x128xbf16, #tpu.memory_space<vmem>>)
    %c0_49 = arith.constant 0 : index
    %c0_50 = arith.constant 0 : index
    %97 = vector.load %arg28[%c0_49, %c0_50] : memref<256x128xbf16, #tpu.memory_space<vmem>>, vector<256x128xbf16>
    %cst_51 = arith.constant dense<0.000000e+00> : vector<16x128xf32>
    %98 = tpu.matmul %94, %97, %cst_51 {dimension_numbers = #tpu.dot_dimension_numbers<[1], [0], [0], [1], [0, 0, 1, 1], [], []>} : vector<16x256xbf16>, vector<256x128xbf16>, vector<16x128xf32> -> vector<16x128xf32>
    %c0_52 = arith.constant 0 : index
    %c0_53 = arith.constant 0 : index
    %99 = vector.load %arg10[%c0_52, %c0_53] : memref<1x128xf32, #tpu.memory_space<vmem>>, vector<1x128xf32>
    %100 = vector.broadcast %99 : vector<1x128xf32> to vector<16x128xf32>
    %101 = arith.addf %98, %100 : vector<16x128xf32>
    %cst_54 = arith.constant 0.000000e+00 : f32
    %102 = vector.broadcast %cst_54 : f32 to vector<16x128xf32>
    %103 = arith.cmpf ogt, %101, %102 : vector<16x128xf32>
    %cst_55 = arith.constant 0.000000e+00 : f32
    %104 = vector.broadcast %cst_55 : f32 to vector<16x128xf32>
    %105 = arith.minimumf %101, %104 : vector<16x128xf32>
    %106 = math.exp %105 : vector<16x128xf32>
    %cst_56 = arith.constant 1.000000e+00 : f32
    %107 = vector.broadcast %cst_56 : f32 to vector<16x128xf32>
    %108 = arith.subf %106, %107 : vector<16x128xf32>
    %109 = arith.select %103, %101, %108 : vector<16x128xi1>, vector<16x128xf32>
    %110 = arith.truncf %109 : vector<16x128xf32> to vector<16x128xbf16>
    %c2_i32_57 = arith.constant 2 : i32
    %111 = tpu.memref_slice %arg32[%c2_i32_57] : memref<8x!tpu.dma_semaphore, #tpu.memory_space<semaphore_mem>> -> memref<1x!tpu.dma_semaphore, #tpu.memory_space<semaphore_mem>>
    %112 = tpu.memref_squeeze %111 : memref<1x!tpu.dma_semaphore, #tpu.memory_space<semaphore_mem>> -> memref<!tpu.dma_semaphore, #tpu.memory_space<semaphore_mem>>
    tpu.wait_dma2 semaphore(%112 : memref<!tpu.dma_semaphore, #tpu.memory_space<semaphore_mem>>) src(%arg17 : memref<16x512xbf16, #tpu.memory_space<any>>) dst(%arg26 : memref<16x512xbf16, #tpu.memory_space<vmem>>)
    %113 = vector.extract_strided_slice %60 {offsets = [0, 512], sizes = [16, 512], strides = [1, 1]} : vector<16x1024xf32> to vector<16x512xf32>
    %c0_58 = arith.constant 0 : index
    %c0_59 = arith.constant 0 : index
    %114 = vector.load %arg26[%c0_58, %c0_59] : memref<16x512xbf16, #tpu.memory_space<vmem>>, vector<16x512xbf16>
    %cst_60 = arith.constant dense<0.000000e+00> : vector<16x512xf32>
    %115 = tpu.matmul %19, %114, %cst_60 {dimension_numbers = #tpu.dot_dimension_numbers<[1], [0], [0], [1], [0, 0, 1, 1], [], []>} : vector<16x16xbf16>, vector<16x512xbf16>, vector<16x512xf32> -> vector<16x512xf32>
    %116 = arith.addf %113, %115 : vector<16x512xf32>
    %c0_61 = arith.constant 0 : index
    %c0_62 = arith.constant 0 : index
    %117 = vector.load %arg11[%c0_61, %c0_62] : memref<1x512xf32, #tpu.memory_space<vmem>>, vector<1x512xf32>
    %118 = vector.broadcast %117 : vector<1x512xf32> to vector<16x512xf32>
    %119 = arith.addf %116, %118 : vector<16x512xf32>
    %cst_63 = arith.constant 0.000000e+00 : f32
    %120 = vector.broadcast %cst_63 : f32 to vector<16x512xf32>
    %121 = arith.cmpf ogt, %119, %120 : vector<16x512xf32>
    %cst_64 = arith.constant 0.000000e+00 : f32
    %122 = vector.broadcast %cst_64 : f32 to vector<16x512xf32>
    %123 = arith.minimumf %119, %122 : vector<16x512xf32>
    %124 = math.exp %123 : vector<16x512xf32>
    %cst_65 = arith.constant 1.000000e+00 : f32
    %125 = vector.broadcast %cst_65 : f32 to vector<16x512xf32>
    %126 = arith.subf %124, %125 : vector<16x512xf32>
    %127 = arith.select %121, %119, %126 : vector<16x512xi1>, vector<16x512xf32>
    %128 = arith.truncf %127 : vector<16x512xf32> to vector<16x512xbf16>
    %c5_i32_66 = arith.constant 5 : i32
    %129 = tpu.memref_slice %arg32[%c5_i32_66] : memref<8x!tpu.dma_semaphore, #tpu.memory_space<semaphore_mem>> -> memref<1x!tpu.dma_semaphore, #tpu.memory_space<semaphore_mem>>
    %130 = tpu.memref_squeeze %129 : memref<1x!tpu.dma_semaphore, #tpu.memory_space<semaphore_mem>> -> memref<!tpu.dma_semaphore, #tpu.memory_space<semaphore_mem>>
    tpu.wait_dma2 semaphore(%130 : memref<!tpu.dma_semaphore, #tpu.memory_space<semaphore_mem>>) src(%arg20 : memref<512x256xbf16, #tpu.memory_space<any>>) dst(%arg29 : memref<512x256xbf16, #tpu.memory_space<vmem>>)
    %c0_67 = arith.constant 0 : index
    %c0_68 = arith.constant 0 : index
    %131 = vector.load %arg29[%c0_67, %c0_68] : memref<512x256xbf16, #tpu.memory_space<vmem>>, vector<512x256xbf16>
    %cst_69 = arith.constant dense<0.000000e+00> : vector<16x256xf32>
    %132 = tpu.matmul %128, %131, %cst_69 {dimension_numbers = #tpu.dot_dimension_numbers<[1], [0], [0], [1], [0, 0, 1, 1], [], []>} : vector<16x512xbf16>, vector<512x256xbf16>, vector<16x256xf32> -> vector<16x256xf32>
    %c0_70 = arith.constant 0 : index
    %c0_71 = arith.constant 0 : index
    %133 = vector.load %arg12[%c0_70, %c0_71] : memref<1x256xf32, #tpu.memory_space<vmem>>, vector<1x256xf32>
    %134 = vector.broadcast %133 : vector<1x256xf32> to vector<16x256xf32>
    %135 = arith.addf %132, %134 : vector<16x256xf32>
    %cst_72 = arith.constant 0.000000e+00 : f32
    %136 = vector.broadcast %cst_72 : f32 to vector<16x256xf32>
    %137 = arith.cmpf ogt, %135, %136 : vector<16x256xf32>
    %cst_73 = arith.constant 0.000000e+00 : f32
    %138 = vector.broadcast %cst_73 : f32 to vector<16x256xf32>
    %139 = arith.minimumf %135, %138 : vector<16x256xf32>
    %140 = math.exp %139 : vector<16x256xf32>
    %cst_74 = arith.constant 1.000000e+00 : f32
    %141 = vector.broadcast %cst_74 : f32 to vector<16x256xf32>
    %142 = arith.subf %140, %141 : vector<16x256xf32>
    %143 = arith.select %137, %135, %142 : vector<16x256xi1>, vector<16x256xf32>
    %144 = arith.truncf %143 : vector<16x256xf32> to vector<16x256xbf16>
    %c6_i32_75 = arith.constant 6 : i32
    %145 = tpu.memref_slice %arg32[%c6_i32_75] : memref<8x!tpu.dma_semaphore, #tpu.memory_space<semaphore_mem>> -> memref<1x!tpu.dma_semaphore, #tpu.memory_space<semaphore_mem>>
    %146 = tpu.memref_squeeze %145 : memref<1x!tpu.dma_semaphore, #tpu.memory_space<semaphore_mem>> -> memref<!tpu.dma_semaphore, #tpu.memory_space<semaphore_mem>>
    tpu.wait_dma2 semaphore(%146 : memref<!tpu.dma_semaphore, #tpu.memory_space<semaphore_mem>>) src(%arg21 : memref<256x128xbf16, #tpu.memory_space<any>>) dst(%arg30 : memref<256x128xbf16, #tpu.memory_space<vmem>>)
    %c0_76 = arith.constant 0 : index
    %c0_77 = arith.constant 0 : index
    %147 = vector.load %arg30[%c0_76, %c0_77] : memref<256x128xbf16, #tpu.memory_space<vmem>>, vector<256x128xbf16>
    %cst_78 = arith.constant dense<0.000000e+00> : vector<16x128xf32>
    %148 = tpu.matmul %144, %147, %cst_78 {dimension_numbers = #tpu.dot_dimension_numbers<[1], [0], [0], [1], [0, 0, 1, 1], [], []>} : vector<16x256xbf16>, vector<256x128xbf16>, vector<16x128xf32> -> vector<16x128xf32>
    %c0_79 = arith.constant 0 : index
    %c0_80 = arith.constant 0 : index
    %149 = vector.load %arg13[%c0_79, %c0_80] : memref<1x128xf32, #tpu.memory_space<vmem>>, vector<1x128xf32>
    %150 = vector.broadcast %149 : vector<1x128xf32> to vector<16x128xf32>
    %151 = arith.addf %148, %150 : vector<16x128xf32>
    %cst_81 = arith.constant 0.000000e+00 : f32
    %152 = vector.broadcast %cst_81 : f32 to vector<16x128xf32>
    %153 = arith.cmpf ogt, %151, %152 : vector<16x128xf32>
    %cst_82 = arith.constant 0.000000e+00 : f32
    %154 = vector.broadcast %cst_82 : f32 to vector<16x128xf32>
    %155 = arith.minimumf %151, %154 : vector<16x128xf32>
    %156 = math.exp %155 : vector<16x128xf32>
    %cst_83 = arith.constant 1.000000e+00 : f32
    %157 = vector.broadcast %cst_83 : f32 to vector<16x128xf32>
    %158 = arith.subf %156, %157 : vector<16x128xf32>
    %159 = arith.select %153, %151, %158 : vector<16x128xi1>, vector<16x128xf32>
    %160 = arith.truncf %159 : vector<16x128xf32> to vector<16x128xbf16>
    %c7_i32_84 = arith.constant 7 : i32
    %161 = tpu.memref_slice %arg32[%c7_i32_84] : memref<8x!tpu.dma_semaphore, #tpu.memory_space<semaphore_mem>> -> memref<1x!tpu.dma_semaphore, #tpu.memory_space<semaphore_mem>>
    %162 = tpu.memref_squeeze %161 : memref<1x!tpu.dma_semaphore, #tpu.memory_space<semaphore_mem>> -> memref<!tpu.dma_semaphore, #tpu.memory_space<semaphore_mem>>
    tpu.wait_dma2 semaphore(%162 : memref<!tpu.dma_semaphore, #tpu.memory_space<semaphore_mem>>) src(%arg22 : memref<256x128xbf16, #tpu.memory_space<any>>) dst(%arg31 : memref<256x128xbf16, #tpu.memory_space<vmem>>)
    %163 = tpu.concatenate %110, %160 in 1 : vector<16x128xbf16>, vector<16x128xbf16> -> vector<16x256xbf16>
    %c0_85 = arith.constant 0 : index
    %c0_86 = arith.constant 0 : index
    %164 = vector.load %arg31[%c0_85, %c0_86] : memref<256x128xbf16, #tpu.memory_space<vmem>>, vector<256x128xbf16>
    %cst_87 = arith.constant dense<0.000000e+00> : vector<16x128xf32>
    %165 = tpu.matmul %163, %164, %cst_87 {dimension_numbers = #tpu.dot_dimension_numbers<[1], [0], [0], [1], [0, 0, 1, 1], [], []>} : vector<16x256xbf16>, vector<256x128xbf16>, vector<16x128xf32> -> vector<16x128xf32>
    %c0_88 = arith.constant 0 : index
    %c0_89 = arith.constant 0 : index
    %166 = vector.load %arg14[%c0_88, %c0_89] : memref<1x128xf32, #tpu.memory_space<vmem>>, vector<1x128xf32>
    %167 = vector.broadcast %166 : vector<1x128xf32> to vector<16x128xf32>
    %168 = arith.addf %165, %167 : vector<16x128xf32>
    %c1 = arith.constant 1 : index
    %c0_90 = arith.constant 0 : index
    %c0_91 = arith.constant 0 : index
    %169 = vector.load %arg23[%c1, %c0_90, %c0_91] : memref<2x16x128xf32, #tpu.memory_space<vmem>>, vector<1x16x128xf32>
    %170 = vector.shape_cast %169 : vector<1x16x128xf32> to vector<16x128xf32>
    %171 = vector.shape_cast %168 : vector<16x128xf32> to vector<1x16x128xf32>
    tpu.vector_store %arg23[%c1, %c0_90, %c0_91], %171 {strides = array<i32>} : memref<2x16x128xf32, #tpu.memory_space<vmem>>, vector<1x16x128xf32>,
    return
  }
}

</mosaic_0001>

<bundles_post_ra>
// kernel: actor_critic_forward.1
= control target key start
LH: loop header
LB: loop body
LE: loop exit
PB: predicated region body
PF: predicated region fallthrough
CT: control target
= control target key end

     0   :  { %s3457_s0 = inlined_call_operand.vmem [shape: f32[16,48], index: 0, kind: input, shape index: {}]   ;;  %s3458_s1 = inlined_call_operand.vmem [shape: f32[16,16], index: 1, kind: input, shape index: {}]   ;;  %s3459_s2 = inlined_call_operand.hbm [shape: bf16[48,256], index: 2, kind: input, shape index: {}]   ;;  %s3460_s3 = inlined_call_operand.vmem [shape: f32[1,256], index: 3, kind: input, shape index: {}]   ;;  %s3461_s4 = inlined_call_operand.hbm [shape: bf16[256,128], index: 4, kind: input, shape index: {}]   ;;  %s3462_s5 = inlined_call_operand.hbm [shape: f32[1,128], index: 5, kind: input, shape index: {}]   ;;  %s3463_s6 = inlined_call_operand.vmem [shape: bf16[128,128], index: 6, kind: input, shape index: {}]   ;;  %s3464_s7 = inlined_call_operand.hbm [shape: f32[1,128], index: 7, kind: input, shape index: {}]   ;;  %s3465_s8 = inlined_call_operand.hbm [shape: f32[1,512], index: 8, kind: input, shape index: {}]   ;;  %s3466_s9 = inlined_call_operand.hbm [shape: f32[1,256], index: 9, kind: input, shape index: {}]   ;;  %s3467_s10 = inlined_call_operand.hbm [shape: f32[1,128], index: 10, kind: input, shape index: {}]   ;;  %s3468_s11 = inlined_call_operand.hbm [shape: f32[1,512], index: 11, kind: input, shape index: {}]   ;;  %s3469_s12 = inlined_call_operand.hbm [shape: f32[1,256], index: 12, kind: input, shape index: {}]   ;;  %s3470_s13 = inlined_call_operand.hbm [shape: f32[1,128], index: 13, kind: input, shape index: {}]   ;;  %s3471_s14 = inlined_call_operand.vmem [shape: f32[1,128], index: 14, kind: input, shape index: {}]   ;;  %s3472_s15 = inlined_call_operand.hbm [shape: bf16[48,1024], index: 15, kind: input, shape index: {}]   ;;  %s3473_s16 = inlined_call_operand.hbm [shape: bf16[128,512], index: 16, kind: input, shape index: {}]   ;;  %s3474_s17 = inlined_call_operand.vmem [shape: bf16[16,512], index: 17, kind: input, shape index: {}]   ;;  %s3475_s18 = inlined_call_operand.hbm [shape: bf16[512,256], index: 18, kind: input, shape index: {}]   ;;  %s3476_s19 = inlined_call_operand.hbm [shape: bf16[256,128], index: 19, kind: input, shape index: {}]   ;;  %s3477_s20 = inlined_call_operand.hbm [shape: bf16[512,256], index: 20, kind: input, shape index: {}]   ;;  %s3478_s21 = inlined_call_operand.hbm [shape: bf16[256,128], index: 21, kind: input, shape index: {}]   ;;  %s3479_s22 = inlined_call_operand.hbm [shape: bf16[256,128], index: 22, kind: input, shape index: {}]   ;;  %s3480_s23 = inlined_call_operand.vmem [shape: f32[2,16,128], index: 23, kind: output, shape index: {}]  }
   0x1   :  { %3490 = sst [smem:[#allocation58_spill]] %s3457_s0 }
   0x2   :  { %3491 = sst [smem:[#allocation59_spill]] %s3458_s1 }
   0x3   :  { %3492 = sst [smem:[#allocation60_spill]] %s3459_s2 }
   0x4   :  { %3493 = sst [smem:[#allocation61_spill]] %s3460_s3 }
   0x5   :  { %3494 = sst [smem:[#allocation62_spill]] %s3461_s4 }
   0x6   :  { %3495 = sst [smem:[#allocation63_spill]] %s3462_s5 }
   0x7   :  { %3496 = sst [smem:[#allocation64_spill]] %s3463_s6 }
   0x8   :  { %3497 = sst [smem:[#allocation65_spill]] %s3464_s7 }
   0x9   :  { %3498 = sst [smem:[#allocation66_spill]] %s3471_s14 }
   0xa   :  { %3499 = sst [smem:[#allocation67_spill]] %s3479_s22 }
   0xb   :  { %3500 = sst [smem:[#allocation68_spill]] %s3480_s23 }
   0xc   :  { %28 = vsyncpa [#allocation12], 0 }
   0xd   :  { %29 = vsyncpa [#allocation14], 0 }
   0xe   :  { %30 = vsyncpa [#allocation17], 0 }
   0xf   :  { %31 = vsyncpa [#allocation20], 0 }
  0x10   :  { %32 = vsyncpa [#allocation23], 0 }
  0x11   :  { %33 = vsyncpa [#allocation26], 0  ;;  %s2851_s4 = smov [#allocation13]   ;;  %s3501_s5 = sld [smem:[#allocation62_spill]] }
  0x12   :  { %s57_s30 = sshll.u32 %s2851_s4, 4  ;;  %s58_s30 = int_to_ptr.vmem [resolvable:$true] %s57_s30 }
  0x17   :  { %s2537_s1 = scalar_lea.hbm %s3501_s5, 2048 }
  0x18   :  { %p2538_p0 = scmp.ne.s32.totalorder %s3501_s5, %s2537_s1  ;;  %p2541_p1 = scmp.lt.u32.totalorder %s2537_s1, %s3501_s5 }
  0x1a   :  { %p2543_p2 = pnand %p2541_p1, %p2538_p0 }
  0x1c   :  { %2546 = shalt.err (!%p2543_p2)
}
  0x1d   :  { %s2547_s7 = scalar_lea.vmem %s58_s30, 2048  ;;  %p2552_p4 = scmp.lt.s32.totalorder %s58_s30, %s58_s30 }
  0x1e   :  { %p2548_p3 = scmp.ne.s32.totalorder %s58_s30, %s2547_s7  ;;  %p2553_p5 = scmp.lt.s32.totalorder %s2547_s7, %s2547_s7 }
  0x20   :  { %p2554_p6 = por %p2553_p5, %p2552_p4 }
  0x22   :  { %p2555_p7 = pnand %p2554_p6, %p2548_p3 }
  0x24   :  { %2558 = shalt.err (!%p2555_p7)
}
  0x25   :  { %s2852_s28 = smov 64   ;;  %s2853_s29 = smov 4  }
  0x26   :  { %63 = dma.hbm_to_vmem [thread:$0]  %s3501_s5, 2048, %s58_s30, [#allocation14], %s2852_s28, %s2852_s28, %s2853_s29  }
  0x27   :  { %s2854_s4 = smov [#allocation16]   ;;  %s2855_s25 = smov [#allocation19]  }
  0x28   :  { %s82_s24 = sshll.u32 %s2854_s4, 4  ;;  %s102_s1 = sshll.u32 %s2855_s25, 4  ;;  %s83_s24 = int_to_ptr.vmem [resolvable:$true] %s82_s24  ;;  %s103_s1 = int_to_ptr.vmem [resolvable:$true] %s102_s1 }
  0x29   :  { %s3502_s6 = sld [smem:[#allocation65_spill]] }
  0x2f   :  { %s2559_s27 = scalar_lea.hbm %s3502_s6, 16 }
  0x30   :  { %p2560_p8 = scmp.ne.s32.totalorder %s3502_s6, %s2559_s27  ;;  %p2563_p9 = scmp.lt.u32.totalorder %s2559_s27, %s3502_s6 }
  0x32   :  { %p2565_p10 = pnand %p2563_p9, %p2560_p8 }
  0x34   :  { %2568 = shalt.err (!%p2565_p10)
}
  0x35   :  { %s2569_s30 = scalar_lea.vmem %s83_s24, 16  ;;  %s2573_s5 = scalar_lea.vmem %s83_s24, 32 }
  0x36   :  { %p2570_p11 = scmp.ne.s32.totalorder %s83_s24, %s2569_s30  ;;  %p2574_p12 = scmp.lt.s32.totalorder %s83_s24, %s83_s24 }
  0x37   :  { %p2575_p13 = scmp.lt.s32.totalorder %s2573_s5, %s2569_s30 }
  0x39   :  { %p2576_p0 = por %p2575_p13, %p2574_p12 }
  0x3b   :  { %p2577_p1 = pnand %p2576_p0, %p2570_p11 }
  0x3d   :  { %2580 = shalt.err (!%p2577_p1)
}
  0x3e   :  { %85 = dma.hbm_to_vmem [thread:$0]  %s3502_s6, 16, %s83_s24, [#allocation17]  }
  0x3f   :  { %s2581_s22 = scalar_lea.hbm %s3466_s9, 32 }
  0x40   :  { %p2582_p2 = scmp.ne.s32.totalorder %s3466_s9, %s2581_s22  ;;  %p2585_p3 = scmp.lt.u32.totalorder %s2581_s22, %s3466_s9 }
  0x42   :  { %p2587_p4 = pnand %p2585_p3, %p2582_p2 }
  0x44   :  { %2590 = shalt.err (!%p2587_p4)
}
  0x45   :  { %s2591_s27 = scalar_lea.vmem %s103_s1, 32  ;;  %p2596_p6 = scmp.lt.s32.totalorder %s103_s1, %s103_s1 }
  0x46   :  { %p2592_p5 = scmp.ne.s32.totalorder %s103_s1, %s2591_s27  ;;  %p2597_p7 = scmp.lt.s32.totalorder %s2591_s27, %s2591_s27 }
  0x48   :  { %p2598_p8 = por %p2597_p7, %p2596_p6 }
  0x4a   :  { %p2599_p9 = pnand %p2598_p8, %p2592_p5 }
  0x4c   :  { %2602 = shalt.err (!%p2599_p9)
}
  0x4d   :  { %105 = dma.hbm_to_vmem [thread:$0]  %s3466_s9, 32, %s103_s1, [#allocation20]  }
  0x4e   :  { %s2856_s7 = smov [#allocation22]   ;;  %s2857_s5 = smov [#allocation11]  }
  0x4f   :  { %s122_s30 = sshll.u32 %s2856_s7, 4  ;;  %s43_s3 = sshll.u32 %s2857_s5, 4  ;;  %s123_s30 = int_to_ptr.vmem [resolvable:$true] %s122_s30  ;;  %s44_s3 = int_to_ptr.vmem [resolvable:$true] %s43_s3 }
  0x50   :  { %s2603_s4 = scalar_lea.hbm %s3468_s11, 64 }
  0x51   :  { %p2604_p10 = scmp.ne.s32.totalorder %s3468_s11, %s2603_s4  ;;  %p2607_p11 = scmp.lt.u32.totalorder %s2603_s4, %s3468_s11 }
  0x53   :  { %p2609_p12 = pnand %p2607_p11, %p2604_p10 }
  0x55   :  { %2612 = shalt.err (!%p2609_p12)
}
  0x56   :  { %s2613_s9 = scalar_lea.vmem %s123_s30, 64  ;;  %p2618_p0 = scmp.lt.s32.totalorder %s123_s30, %s123_s30 }
  0x57   :  { %p2614_p13 = scmp.ne.s32.totalorder %s123_s30, %s2613_s9  ;;  %p2619_p1 = scmp.lt.s32.totalorder %s2613_s9, %s2613_s9 }
  0x59   :  { %p2620_p2 = por %p2619_p1, %p2618_p0 }
  0x5b   :  { %p2621_p3 = pnand %p2620_p2, %p2614_p13 }
  0x5d   :  { %2624 = shalt.err (!%p2621_p3)
}
  0x5e   :  { %125 = dma.hbm_to_vmem [thread:$0]  %s3468_s11, 64, %s123_s30, [#allocation23]  }
  0x5f   :  { %s3503_s6 = sld [smem:[#allocation60_spill]] }
  0x65   :  { %s2625_s7 = scalar_lea.hbm %s3503_s6, 768 }
  0x66   :  { %p2626_p4 = scmp.ne.s32.totalorder %s3503_s6, %s2625_s7  ;;  %p2629_p5 = scmp.lt.u32.totalorder %s2625_s7, %s3503_s6 }
  0x68   :  { %p2631_p6 = pnand %p2629_p5, %p2626_p4 }
  0x6a   :  { %2634 = shalt.err (!%p2631_p6)
}
  0x6b   :  { %s2635_s22 = scalar_lea.vmem %s44_s3, 768  ;;  %p2640_p8 = scmp.lt.s32.totalorder %s44_s3, %s44_s3 }
  0x6c   :  { %p2636_p7 = scmp.ne.s32.totalorder %s44_s3, %s2635_s22  ;;  %p2641_p9 = scmp.lt.s32.totalorder %s2635_s22, %s2635_s22 }
  0x6e   :  { %p2642_p10 = por %p2641_p9, %p2640_p8 }
  0x70   :  { %p2643_p11 = pnand %p2642_p10, %p2636_p7 }
  0x72   :  { %2646 = shalt.err (!%p2643_p11)
}
  0x73   :  { %s2858_s11 = smov 128   ;;  %s2859_s30 = smov 8  }
  0x74   :  { %49 = dma.hbm_to_vmem [thread:$0]  %s3503_s6, 768, %s44_s3, [#allocation12], %s2858_s11, %s2858_s11, %s2859_s30  }
  0x75   :  { %s2860_s26 = smov [#allocation15]   ;;  %s2861_s1 = smov [#allocation18]  }
  0x76   :  { %s70_s9 = sshll.u32 %s2860_s26, 4  ;;  %s92_s2 = sshll.u32 %s2861_s1, 4  ;;  %s71_s9 = int_to_ptr.vmem [resolvable:$true] %s70_s9  ;;  %s93_s2 = int_to_ptr.vmem [resolvable:$true] %s92_s2 }
  0x77   :  { %s3504_s7 = sld [smem:[#allocation63_spill]] }
  0x7d   :  { %s2647_s5 = scalar_lea.hbm %s3504_s7, 16 }
  0x7e   :  { %p2648_p12 = scmp.ne.s32.totalorder %s3504_s7, %s2647_s5  ;;  %p2651_p13 = scmp.lt.u32.totalorder %s2647_s5, %s3504_s7 }
  0x80   :  { %p2653_p0 = pnand %p2651_p13, %p2648_p12 }
  0x82   :  { %2656 = shalt.err (!%p2653_p0)
}
  0x83   :  { %s2657_s3 = scalar_lea.vmem %s71_s9, 16  ;;  %s2661_s6 = scalar_lea.vmem %s71_s9, 32 }
  0x84   :  { %p2658_p1 = scmp.ne.s32.totalorder %s71_s9, %s2657_s3  ;;  %p2662_p2 = scmp.lt.s32.totalorder %s71_s9, %s71_s9 }
  0x85   :  { %p2663_p3 = scmp.lt.s32.totalorder %s2661_s6, %s2657_s3 }
  0x87   :  { %p2664_p4 = por %p2663_p3, %p2662_p2 }
  0x89   :  { %p2665_p5 = pnand %p2664_p4, %p2658_p1 }
  0x8b   :  { %2668 = shalt.err (!%p2665_p5)
}
  0x8c   :  { %73 = dma.hbm_to_vmem [thread:$0]  %s3504_s7, 16, %s71_s9, [#allocation14]  }
  0x8d   :  { %s2669_s27 = scalar_lea.hbm %s3465_s8, 64 }
  0x8e   :  { %p2670_p6 = scmp.ne.s32.totalorder %s3465_s8, %s2669_s27  ;;  %p2673_p7 = scmp.lt.u32.totalorder %s2669_s27, %s3465_s8 }
  0x90   :  { %p2675_p8 = pnand %p2673_p7, %p2670_p6 }
  0x92   :  { %2678 = shalt.err (!%p2675_p8)
}
  0x93   :  { %s2679_s4 = scalar_lea.vmem %s93_s2, 64  ;;  %p2684_p10 = scmp.lt.s32.totalorder %s93_s2, %s93_s2 }
  0x94   :  { %p2680_p9 = scmp.ne.s32.totalorder %s93_s2, %s2679_s4  ;;  %p2685_p11 = scmp.lt.s32.totalorder %s2679_s4, %s2679_s4 }
  0x96   :  { %p2686_p12 = por %p2685_p11, %p2684_p10 }
  0x98   :  { %p2687_p13 = pnand %p2686_p12, %p2680_p9 }
  0x9a   :  { %2690 = shalt.err (!%p2687_p13)
}
  0x9b   :  { %95 = dma.hbm_to_vmem [thread:$0]  %s3465_s8, 64, %s93_s2, [#allocation17]  }
  0x9c   :  { %s2862_s22 = smov [#allocation21]   ;;  %s2863_s6 = smov [#allocation24]  }
  0x9d   :  { %s112_s3 = sshll.u32 %s2862_s22, 4  ;;  %s132_s23 = sshll.u32 %s2863_s6, 4  ;;  %s113_s3 = int_to_ptr.vmem [resolvable:$true] %s112_s3  ;;  %s133_s23 = int_to_ptr.vmem [resolvable:$true] %s132_s23 }
  0x9e   :  { %s2691_s1 = scalar_lea.hbm %s3467_s10, 16 }
  0x9f   :  { %p2692_p0 = scmp.ne.s32.totalorder %s3467_s10, %s2691_s1  ;;  %p2695_p1 = scmp.lt.u32.totalorder %s2691_s1, %s3467_s10 }
  0xa1   :  { %p2697_p2 = pnand %p2695_p1, %p2692_p0 }
  0xa3   :  { %2700 = shalt.err (!%p2697_p2)
}
  0xa4   :  { %s2701_s8 = scalar_lea.vmem %s113_s3, 16  ;;  %s2705_s2 = scalar_lea.vmem %s113_s3, 32 }
  0xa5   :  { %p2702_p3 = scmp.ne.s32.totalorder %s113_s3, %s2701_s8  ;;  %p2706_p4 = scmp.lt.s32.totalorder %s113_s3, %s113_s3 }
  0xa6   :  { %p2707_p5 = scmp.lt.s32.totalorder %s2705_s2, %s2701_s8 }
  0xa8   :  { %p2708_p6 = por %p2707_p5, %p2706_p4 }
  0xaa   :  { %p2709_p7 = pnand %p2708_p6, %p2702_p3 }
  0xac   :  { %2712 = shalt.err (!%p2709_p7)
}
  0xad   :  { %115 = dma.hbm_to_vmem [thread:$0]  %s3467_s10, 16, %s113_s3, [#allocation20]  }
  0xae   :  { %s2713_s22 = scalar_lea.hbm %s3469_s12, 32 }
  0xaf   :  { %p2714_p8 = scmp.ne.s32.totalorder %s3469_s12, %s2713_s22  ;;  %p2717_p9 = scmp.lt.u32.totalorder %s2713_s22, %s3469_s12 }
  0xb1   :  { %p2719_p10 = pnand %p2717_p9, %p2714_p8 }
  0xb3   :  { %2722 = shalt.err (!%p2719_p10)
}
  0xb4   :  { %s2723_s27 = scalar_lea.vmem %s133_s23, 32  ;;  %p2728_p12 = scmp.lt.s32.totalorder %s133_s23, %s133_s23 }
  0xb5   :  { %p2724_p11 = scmp.ne.s32.totalorder %s133_s23, %s2723_s27  ;;  %p2729_p13 = scmp.lt.s32.totalorder %s2723_s27, %s2723_s27 }
  0xb7   :  { %p2730_p0 = por %p2729_p13, %p2728_p12 }
  0xb9   :  { %p2731_p1 = pnand %p2730_p0, %p2724_p11 }
  0xbb   :  { %2734 = shalt.err (!%p2731_p1)
}
  0xbc   :  { %135 = dma.hbm_to_vmem [thread:$0]  %s3469_s12, 32, %s133_s23, [#allocation23]  }
  0xbd   :  { %s2864_s24 = smov [#allocation25]   ;;  %s2735_s2 = scalar_lea.hbm %s3470_s13, 16 }
  0xbe   :  { %s142_s5 = sshll.u32 %s2864_s24, 4  ;;  %p2736_p2 = scmp.ne.s32.totalorder %s3470_s13, %s2735_s2  ;;  %s143_s5 = int_to_ptr.vmem [resolvable:$true] %s142_s5 }
  0xbf   :  { %p2739_p3 = scmp.lt.u32.totalorder %s2735_s2, %s3470_s13 }
  0xc1   :  { %p2741_p4 = pnand %p2739_p3, %p2736_p2 }
  0xc3   :  { %2744 = shalt.err (!%p2741_p4)
}
  0xc4   :  { %s2745_s22 = scalar_lea.vmem %s143_s5, 16  ;;  %s2749_s12 = scalar_lea.vmem %s143_s5, 32 }
  0xc5   :  { %p2746_p5 = scmp.ne.s32.totalorder %s143_s5, %s2745_s22  ;;  %p2750_p6 = scmp.lt.s32.totalorder %s143_s5, %s143_s5 }
  0xc6   :  { %p2751_p7 = scmp.lt.s32.totalorder %s2749_s12, %s2745_s22 }
  0xc8   :  { %p2752_p8 = por %p2751_p7, %p2750_p6 }
  0xca   :  { %p2753_p9 = pnand %p2752_p8, %p2746_p5 }
  0xcc   :  { %2756 = shalt.err (!%p2753_p9)
}
  0xcd   :  { %145 = dma.hbm_to_vmem [thread:$0]  %s3470_s13, 16, %s143_s5, [#allocation26]  }
  0xce   :  { %2823 = dma.done.wait [#allocation12], 768  }
  0xcf   :  { %2824 = vsyncadd [#allocation12], 4294966528 }
  0xd0   :  { %2825 = dma.done.wait [#allocation14], 2064  }
  0xd1   :  { %2826 = vsyncadd [#allocation14], 4294965232 }
  0xd2   :  { %2827 = dma.done.wait [#allocation17], 80  }
  0xd3   :  { %2828 = vsyncadd [#allocation17], 4294967216 }
  0xd4   :  { %2829 = dma.done.wait [#allocation20], 48  }
  0xd5   :  { %2830 = vsyncadd [#allocation20], 4294967248 }
  0xd6   :  { %2831 = dma.done.wait [#allocation23], 96  }
  0xd7   :  { %2832 = vsyncadd [#allocation23], 4294967200 }
  0xd8   :  { %2833 = dma.done.wait [#allocation26], 16  }
  0xd9   :  { %2834 = vsyncadd [#allocation26], 4294967280  ;;  %s183_s25 = sld [smem:[#allocation0]]   ;;  %s2865_s26 = smov 1024  }
  0xda   :  { %195 = sst [smem:[#allocation28]] %s2865_s26  ;;  %s2866_s1 = smov [#allocation2]  }
  0xdb   :  { %197 = sst [smem:[#allocation28 + $0x1]] %s2865_s26  ;;  %s191_s27 = sshll.u32 %s2866_s1, 4  ;;  %s192_s27 = int_to_ptr.vmem [resolvable:$true] %s191_s27 }
  0xdc   :  { %199 = sst [smem:[#allocation28 + $0x2]] %s2859_s30  ;;  %s2867_s3 = smov 2  }
  0xdd   :  { %201 = sst [smem:[#allocation28 + $0x3]] %s2852_s28  ;;  %s2868_s24 = smov 512  }
  0xde   :  { %203 = sst [smem:[#allocation28 + $0x4]] %s2858_s11  ;;  %s2869_s5 = smov [#allocation10]  }
  0xdf   :  { %209 = sst [smem:[#allocation28 + $0x7]] %s2852_s28  ;;  %s2157_s13 = sshll.u32 %s183_s25, 26 }
  0xe0   :  { %211 = sst [smem:[#allocation28 + $0x8]] %s2853_s29  ;;  %s3138_s10 = sadd.s32 134217728, %s2157_s13 }
  0xe1   :  { %205 = sst [smem:[#allocation28 + $0x5]] %s2867_s3  ;;  %s2870_s30 = smov [#allocation27]  }
  0xe2   :  { %207 = sst [smem:[#allocation28 + $0x6]] %s2868_s24  ;;  %s2871_s2 = smov [#allocation3]  }
  0xe3   :  { %213 = dma.general %s3472_s15, 3072, %s192_s27, %s2869_s5, %s2870_s30, [#allocation28], %s3138_s10, 0  }
  0xe4   :  { %230 = sst [smem:[#allocation30]] %s2868_s24  ;;  %s226_s14 = sshll.u32 %s2871_s2, 4  ;;  %s227_s14 = int_to_ptr.vmem [resolvable:$true] %s226_s14 }
  0xe5   :  { %232 = sst [smem:[#allocation30 + $0x1]] %s2868_s24  ;;  %s2872_s4 = smov 256  }
  0xe6   :  { %234 = sst [smem:[#allocation30 + $0x2]] %s2853_s29  ;;  %s2873_s15 = smov [#allocation10 + $0x1]  }
  0xe7   :  { %236 = sst [smem:[#allocation30 + $0x3]] %s2852_s28  ;;  %s2874_s9 = smov [#allocation29]  }
  0xe8   :  { %238 = sst [smem:[#allocation30 + $0x4]] %s2858_s11 }
  0xe9   :  { %240 = sst [smem:[#allocation30 + $0x5]] %s2867_s3 }
  0xea   :  { %242 = sst [smem:[#allocation30 + $0x6]] %s2872_s4 }
  0xeb   :  { %244 = sst [smem:[#allocation30 + $0x7]] %s2852_s28 }
  0xec   :  { %246 = sst [smem:[#allocation30 + $0x8]] %s2853_s29 }
  0xed   :  { %248 = dma.general %s3473_s16, 4096, %s227_s14, %s2873_s15, %s2874_s9, [#allocation30], %s3138_s10, 0  }
  0xee   :  { %v267_v0 = vld [vmem:[%s3474_s17] sm:$0xf]  ;;  %v269_v1 = vld [vmem:[%s3474_s17 + $0x10] sm:$0xf]  ;;  %v271_v2 = vld [vmem:[%s3474_s17 + $0x4] sm:$0xf] }
  0xef   :  { %268 = vst [vmem:[#allocation4] sm:$0xf] %v267_v0  ;;  %270 = vst [vmem:[#allocation4 + $0x4] sm:$0xf] %v269_v1  ;;  %v273_v3 = vld [vmem:[%s3474_s17 + $0x14] sm:$0xf] }
  0xf0   :  { %272 = vst [vmem:[#allocation4 + $0x8] sm:$0xf] %v271_v2  ;;  %v275_v4 = vld [vmem:[%s3474_s17 + $0x8] sm:$0xf]  ;;  %v277_v5 = vld [vmem:[%s3474_s17 + $0x18] sm:$0xf] }
  0xf1   :  { %274 = vst [vmem:[#allocation4 + $0xc] sm:$0xf] %v273_v3  ;;  %276 = vst [vmem:[#allocation4 + $0x10] sm:$0xf] %v275_v4  ;;  %v279_v6 = vld [vmem:[%s3474_s17 + $0xc] sm:$0xf] }
  0xf2   :  { %278 = vst [vmem:[#allocation4 + $0x14] sm:$0xf] %v277_v5  ;;  %v281_v7 = vld [vmem:[%s3474_s17 + $0x1c] sm:$0xf]  ;;  %280 = vst [vmem:[#allocation4 + $0x18] sm:$0xf] %v279_v6 }
  0xf3   :  { %282 = vst [vmem:[#allocation4 + $0x1c] sm:$0xf] %v281_v7 }
  0xf4   :  { %329 = vsyncadd [#allocation10 + $0x2], 512  ;;  %346 = sst [smem:[#allocation33]] %s2872_s4  ;;  %s2875_s15 = smov [#allocation5]   ;;  %v2876_v8 = vmov 0  }
  0xf5   :  { %s342_s9 = sshll.u32 %s2875_s15, 4  ;;  %348 = sst [smem:[#allocation33 + $0x1]] %s2872_s4  ;;  %526 = vmatprep.mubr.bf16.mxu0 %v2876_v8  ;;  %s343_s9 = int_to_ptr.vmem [resolvable:$true] %s342_s9 }
  0xf6   :  { %350 = sst [smem:[#allocation33 + $0x2]] %s2867_s3  ;;  %s2877_s17 = smov [#allocation10 + $0x3]  }
  0xf7   :  { %352 = sst [smem:[#allocation33 + $0x3]] %s2852_s28  ;;  %s2878_s7 = smov [#allocation32]  }
  0xf8   :  { %354 = sst [smem:[#allocation33 + $0x4]] %s2858_s11  ;;  %s2879_s23 = smov [#allocation6]  }
  0xf9   :  { %356 = sst [smem:[#allocation33 + $0x5]] %s2867_s3  ;;  %s373_s6 = sshll.u32 %s2879_s23, 4  ;;  %s374_s6 = int_to_ptr.vmem [resolvable:$true] %s373_s6 }
  0xfa   :  { %358 = sst [smem:[#allocation33 + $0x6]] %s2858_s11  ;;  %s2880_s25 = smov [#allocation7]  }
  0xfb   :  { %360 = sst [smem:[#allocation33 + $0x7]] %s2852_s28  ;;  %s389_s26 = sshll.u32 %s2880_s25, 4  ;;  %s390_s26 = int_to_ptr.vmem [resolvable:$true] %s389_s26 }
  0xfc   :  { %362 = sst [smem:[#allocation33 + $0x8]] %s2853_s29  ;;  %s2757_s1 = scalar_lea.hbm %s3476_s19, 2048 }
  0xfd   :  { %364 = dma.general %s3475_s18, 8192, %s343_s9, %s2877_s17, %s2878_s7, [#allocation33], %s3138_s10, 0  }
  0xfe   :  { %393 = sst [smem:[#allocation39]] %s2872_s4  ;;  %p2758_p10 = scmp.ne.s32.totalorder %s3476_s19, %s2757_s1 }
  0xff   :  { %395 = sst [smem:[#allocation39 + $0x1]] %s2872_s4  ;;  %p2761_p11 = scmp.lt.u32.totalorder %s2757_s1, %s3476_s19 }
 0x100   :  { %397 = sst [smem:[#allocation39 + $0x2]] %s2867_s3 }
 0x101   :  { %399 = sst [smem:[#allocation39 + $0x3]] %s2852_s28  ;;  %p2763_p12 = pnand %p2761_p11, %p2758_p10 }
 0x102   :  { %401 = sst [smem:[#allocation39 + $0x4]] %s2858_s11 }
 0x103   :  { %403 = sst [smem:[#allocation39 + $0x5]] %s2867_s3 }
 0x104   :  { %405 = sst [smem:[#allocation39 + $0x6]] %s2858_s11 }
 0x105   :  { %407 = sst [smem:[#allocation39 + $0x7]] %s2852_s28 }
 0x106   :  { %409 = sst [smem:[#allocation39 + $0x8]] %s2853_s29 }
 0x107   :  { %2766 = shalt.err (!%p2763_p12)  }
 0x108   :  { %s2767_s3 = scalar_lea.vmem %s374_s6, 2048  ;;  %p2772_p0 = scmp.lt.s32.totalorder %s374_s6, %s374_s6 }
 0x109   :  { %p2768_p13 = scmp.ne.s32.totalorder %s374_s6, %s2767_s3  ;;  %p2773_p1 = scmp.lt.s32.totalorder %s2767_s3, %s2767_s3 }
 0x10b   :  { %p2774_p2 = por %p2773_p1, %p2772_p0 }
 0x10d   :  { %p2775_p3 = pnand %p2774_p2, %p2768_p13 }
 0x10f   :  { %2778 = shalt.err (!%p2775_p3)  }
 0x110   :  { %376 = dma.hbm_to_vmem [thread:$0]  %s3476_s19, 2048, %s374_s6, [#allocation10 + $0x4]  ;;  %vm490_vm0 = vcmask 392192   ;;  %v2883_v38 = vmov 0.0   ;;  %v450_v39 = vlaneseq  ;;  %vm2884_vm5 = vmmov 0  }
 0x111   :  { %s2881_s11 = smov [#allocation10 + $0x5]   ;;  %s2882_s5 = smov [#allocation38]  }
 0x112   :  { %411 = dma.general %s3477_s20, 8192, %s390_s26, %s2881_s11, %s2882_s5, [#allocation39], %s3138_s10, 0   ;;  %v3242_v40 = vshrl.u32 %v450_v39, 7 }
 0x113   :  { %s3505_s14 = sld [smem:[#allocation59_spill]]  ;;  %v2436_v12 = vld [vmem:[#allocation11 + $0x4] ss:$8 sps:$4 sm:$0xff]   ;;  %v2438_v13 = vld [vmem:[#allocation11] ss:$8 sps:$4 sm:$0xff]   ;;  %s3506_s10 = sld [smem:[#allocation58_spill]] }
 0x114   :  { %v2439_v14 = vld [vmem:[#allocation11 + $0x14] ss:$8 sps:$4 sm:$0xff]   ;;  %494 = vmatprep.subr.bf16.mxu0 %v2436_v12  ;;  %v2441_v15 = vld [vmem:[#allocation11 + $0x10] ss:$8 sps:$4 sm:$0xff]   ;;  %v2442_v16 = vld [vmem:[#allocation11 + $0x24] ss:$8 sps:$4 sm:$0xff]  }
 0x115   :  { %495 = vmatpush1.bf16.msra.mxu0 %v2438_v13  ;;  %v2444_v17 = vld [vmem:[#allocation11 + $0x20] ss:$8 sps:$4 sm:$0xff]   ;;  %v2445_v19 = vld [vmem:[#allocation13 + $0x40] sm:$0xff]   ;;  %v2447_v22 = vld [vmem:[#allocation13 + $0x48] sm:$0xff]   ;;  %s3507_s23 = sld [smem:[#allocation64_spill]]  ;;  %v3245_v41 = vsub.s32 0, %v3242_v40 }
 0x116   :  { %496 = vmatprep.subr.bf16.mxu0 %v2439_v14  ;;  %v2446_v20 = vld [vmem:[#allocation13] sm:$0xff]   ;;  %2251 = vmatprep.subr.bf16.mxu1 %v2445_v19  ;;  %v2448_v24 = vld [vmem:[#allocation13 + $0x8] sm:$0xff]   ;;  %v2449_v25 = vld [vmem:[#allocation13 + $0x50] sm:$0xff]   ;;  %s3508_s26 = sld [smem:[#allocation61_spill]]  ;;  %v3251_v43 = vsub.s32 1, %v3242_v40  ;;  %s2885_s8 = smov [#allocation8]  }
 0x117   :  { %2252 = vmatpush3.bf16.msra.mxu1 %v2446_v20  ;;  %v2450_v26 = vld [vmem:[#allocation13 + $0x10] sm:$0xff]   ;;  %v2451_v27 = vld [vmem:[#allocation13 + $0x58] sm:$0xff]   ;;  %v2453_v29 = vld [vmem:[#allocation13 + $0x60] sm:$0xff]   ;;  %s420_s2 = sshll.u32 %s2885_s8, 4  ;;  %s2779_s20 = scalar_lea.hbm %s3478_s21, 2048  ;;  %s421_s2 = int_to_ptr.vmem [resolvable:$true] %s420_s2 }
 0x118   :  { %2253 = vmatprep.subr.bf16.mxu1 %v2447_v22  ;;  %v2452_v28 = vld [vmem:[#allocation13 + $0x18] sm:$0xff]   ;;  %v2454_v30 = vld [vmem:[#allocation13 + $0x20] sm:$0xff]   ;;  %v2455_v31 = vld [vmem:[#allocation13 + $0x68] sm:$0xff]   ;;  %p2780_p4 = scmp.ne.s32.totalorder %s3478_s21, %s2779_s20  ;;  %p2783_p5 = scmp.lt.u32.totalorder %s2779_s20, %s3478_s21 }
 0x119   :  { %v439_v9 = vld [vmem:[%s3505_s14] sm:$0xff]  ;;  %v440_v10 = vld [vmem:[%s3505_s14 + $0x8] sm:$0xff]  ;;  %497 = vmatpush1.bf16.msra.mxu0 %v2441_v15  ;;  %v2456_v32 = vld [vmem:[#allocation13 + $0x28] sm:$0xff]   ;;  %s2886_s14 = smov [#allocation9]  }
 0x11a   :  { %v3225_v11 = vpack.c.bf16 %v440_v10, %v439_v9  ;;  %v436_v18 = vld [vmem:[%s3506_s10] sm:$0xff]  ;;  %v437_v21 = vld [vmem:[%s3506_s10 + $0x8] sm:$0xff]  ;;  %498 = vmatprep.subr.bf16.mxu0 %v2442_v16  ;;  %v2176_v22 = vld [vmem:[#allocation15] ss:$0 sm:$0xff]  ;;  %s432_s15 = sshll.u32 %s2886_s14, 4  ;;  %p2785_p6 = pnand %p2783_p5, %p2780_p4  ;;  %s433_s15 = int_to_ptr.vmem [resolvable:$true] %s432_s15 }
 0x11b   :  { %v3233_v23 = vpack.c.bf16 %v437_v21, %v436_v18  ;;  %2254 = vmatpush3.bf16.msra.mxu1 %v2448_v24  ;;  %v2457_v33 = vld [vmem:[#allocation13 + $0x70] sm:$0xff]   ;;  %v2459_v35 = vld [vmem:[#allocation13 + $0x78] sm:$0xff]   ;;  %v2463_v15 = vld [vmem:[%s3507_s23 + $0x10] sm:$0xff]  }
 0x11c   :  { %2255 = vmatprep.subr.bf16.mxu1 %v2449_v25  ;;  %v2458_v34 = vld [vmem:[#allocation13 + $0x30] sm:$0xff]   ;;  %v2460_v36 = vld [vmem:[#allocation13 + $0x38] sm:$0xff]   ;;  %v2464_v16 = vld [vmem:[%s3507_s23 + $0x18] sm:$0xff]  }
 0x11d   :  { %499 = vmatpush1.bf16.msra.mxu0 %v2444_v17  ;;  %v2461_v37 = vld [vmem:[%s3507_s23] sm:$0xff]   ;;  %v2462_v14 = vld [vmem:[%s3507_s23 + $0x8] sm:$0xff]   ;;  %v2467_v19 = vld [vmem:[%s3507_s23 + $0x30] sm:$0xff]  }
 0x11e   :  { %2348 = vmatprep.subr.bf16.mxu0 %v2883_v38  ;;  %v448_v42 = vld [vmem:[%s3508_s26] sm:$0x3]  ;;  %v2466_v18 = vld [vmem:[%s3507_s23 + $0x28] sm:$0xff]   ;;  %v2468_v20 = vld [vmem:[%s3507_s23 + $0x38] sm:$0xff]  }
 0x11f   :  { %2256 = vmatpush3.bf16.msra.mxu1 %v2450_v26  ;;  %v453_v44 = vrot.slane %v448_v42, %v3245_v41  ;;  %v457_v45 = vrot.slane %v448_v42, %v3251_v43  ;;  %v2465_v17 = vld [vmem:[%s3507_s23 + $0x20] sm:$0xff]  }
 0x120   :  { %2171 = vmatmul.mubr.msk.bf16.vlgmr.msra.gmra.mrb[0].mxu0 %vm490_vm0, %v3233_v23  ;;  %2257 = vmatprep.subr.bf16.mxu1 %v2451_v27 }
 0x121   :  { %2349 = vmatpush3.bf16.msra.mxu0 %v2461_v37  ;;  %2364 = vmatprep.mubr.msk.bf16.mxu0 %vm2884_vm5, %v2883_v38 }
 0x122   :  { %2350 = vmatprep.subr.bf16.mxu0 %v2883_v38 }
 0x123   :  { %2258 = vmatpush3.bf16.msra.mxu1 %v2452_v28 }
 0x124   :  { %2259 = vmatprep.subr.bf16.mxu1 %v2453_v29 }
 0x125   :  { %2351 = vmatpush3.bf16.msra.mxu0 %v2462_v14 }
 0x126   :  { %2352 = vmatprep.subr.bf16.mxu0 %v2883_v38 }
 0x127   :  { %2260 = vmatpush3.bf16.msra.mxu1 %v2454_v30 }
 0x128   :  { %2261 = vmatprep.subr.bf16.mxu1 %v2455_v31 }
 0x129   :  { %2353 = vmatpush3.bf16.msra.mxu0 %v2463_v15 }
 0x12a   :  { %2354 = vmatprep.subr.bf16.mxu0 %v2883_v38 }
 0x12b   :  { %2262 = vmatpush3.bf16.msra.mxu1 %v2456_v32 }
 0x12c   :  { %2263 = vmatprep.subr.bf16.mxu1 %v2457_v33 }
 0x12d   :  { %2355 = vmatpush3.bf16.msra.mxu0 %v2464_v16 }
 0x12e   :  { %2356 = vmatprep.subr.bf16.mxu0 %v2883_v38 }
 0x12f   :  { %2264 = vmatpush3.bf16.msra.mxu1 %v2458_v34 }
 0x130   :  { %2265 = vmatprep.subr.bf16.mxu1 %v2459_v35 }
 0x131   :  { %2357 = vmatpush3.bf16.msra.mxu0 %v2465_v17 }
 0x132   :  { %2358 = vmatprep.subr.bf16.mxu0 %v2883_v38 }
 0x133   :  { %2266 = vmatpush3.bf16.msra.mxu1 %v2460_v36 }
 0x135   :  { %2359 = vmatpush3.bf16.msra.mxu0 %v2466_v18 }
 0x136   :  { %2360 = vmatprep.subr.bf16.mxu0 %v2883_v38 }
 0x139   :  { %2361 = vmatpush3.bf16.msra.mxu0 %v2467_v19 }
 0x13a   :  { %2362 = vmatprep.subr.bf16.mxu0 %v2883_v38 }
 0x13d   :  { %2363 = vmatpush3.bf16.msra.mxu0 %v2468_v20 }
 0x1f3   :  { %v528_v46 = vpop.f32.mrb[0].mxu0 }
 0x1f4   :  { %v529_v47 = vadd.f32 %v528_v46, %v453_v44  ;;  %v530_v48 = vpop.f32.mrb[1].mxu0 }
 0x1f5   :  { %v531_v49 = vadd.f32 %v530_v48, %v457_v45  ;;  %v532_v50 = vpop.f32.mrb[2].mxu0 }
 0x1f6   :  { %v541_v51 = vmin.f32 %v529_v47, 0.0  ;;  %v533_v52 = vadd.f32 %v532_v50, %v453_v44  ;;  %v534_v53 = vpop.f32.mrb[3].mxu0  ;;  %vm537_vm1 = vcmp.gt.f32.partialorder %v529_v47, 0.0 }
 0x1f7   :  { %v542_v54 = vmin.f32 %v531_v49, 0.0  ;;  %v535_v55 = vadd.f32 %v534_v53, %v457_v45  ;;  %vm538_vm3 = vcmp.gt.f32.partialorder %v531_v49, 0.0 }
 0x1f8   :  { %v545_v56 = vmul.f32 1.442695, %v541_v51  ;;  %v543_v57 = vmin.f32 %v533_v52, 0.0  ;;  %vm539_vm2 = vcmp.gt.f32.partialorder %v533_v52, 0.0 }
 0x1f9   :  { %v547_v58 = vmul.f32 1.442695, %v542_v54  ;;  %v544_v59 = vmin.f32 %v535_v55, 0.0  ;;  %vm540_vm4 = vcmp.gt.f32.partialorder %v535_v55, 0.0 }
 0x1fa   :  { %2469 = vpow2.f32 %v545_v56  ;;  %v549_v60 = vmul.f32 1.442695, %v543_v57 }
 0x1fb   :  { %2471 = vpow2.f32 %v547_v58  ;;  %v551_v61 = vmul.f32 1.442695, %v544_v59 }
 0x1fc   :  { %2473 = vpow2.f32 %v549_v60 }
 0x1fd   :  { %2475 = vpow2.f32 %v551_v61 }
 0x204   :  { %v2470_v62 = vpop.eup %2469 }
 0x205   :  { %v2472_v63 = vpop.eup %2471  ;;  %v2172_v0 = vadd.f32 -1.0, %v2470_v62 }
 0x206   :  { %v2474_v1 = vpop.eup %2473  ;;  %v2173_v2 = vadd.f32 -1.0, %v2472_v63 }
 0x207   :  { %v2476_v3 = vpop.eup %2475  ;;  %v2174_v4 = vadd.f32 -1.0, %v2474_v1  ;;  %v557_v6 = vsel %vm537_vm1, %v529_v47, %v2172_v0 }
 0x208   :  { %v2175_v5 = vadd.f32 -1.0, %v2476_v3  ;;  %v558_v9 = vsel %vm538_vm3, %v531_v49, %v2173_v2 }
 0x209   :  { %v559_v7 = vsel %vm539_vm2, %v533_v52, %v2174_v4 }
 0x20a   :  { %v560_v10 = vsel %vm540_vm4, %v535_v55, %v2175_v5  ;;  %v561_v12 = vpack.c.bf16 %v559_v7, %v557_v6 }
 0x20b   :  { %v562_v13 = vpack.c.bf16 %v560_v10, %v558_v9 }
 0x20d   :  { %730 = vmatprep.mubr.bf16.mxu1 %v562_v13 }
 0x20e   :  { %731 = vmatmul.mubr.bf16.vlgmr.msra.gmra.mrb[0].mxu1 %v561_v12 }
 0x2e1   :  { %v2267_v21 = vpop.f32.mrb[0].mxu1 }
 0x2e2   :  { %v2268_v24 = vpop.f32.mrb[1].mxu1 }
 0x2e3   :  { %v2269_v25 = vadd.f32 %v2268_v24, %v2267_v21  ;;  %v2270_v26 = vpop.f32.mrb[2].mxu1 }
 0x2e4   :  { %v2271_v27 = vpop.f32.mrb[3].mxu1 }
 0x2e5   :  { %v733_v28 = vadd.f32 %v2269_v25, %v2176_v22  ;;  %v2272_v29 = vadd.f32 %v2271_v27, %v2270_v26 }
 0x2e7   :  { %v741_v30 = vmin.f32 %v733_v28, 0.0  ;;  %v736_v31 = vadd.f32 %v2272_v29, %v2176_v22  ;;  %vm739_vm6 = vcmp.gt.f32.partialorder %v733_v28, 0.0 }
 0x2e9   :  { %v743_v32 = vmul.f32 1.442695, %v741_v30  ;;  %v742_v33 = vmin.f32 %v736_v31, 0.0  ;;  %vm740_vm7 = vcmp.gt.f32.partialorder %v736_v31, 0.0 }
 0x2eb   :  { %2477 = vpow2.f32 %v743_v32  ;;  %v745_v34 = vmul.f32 1.442695, %v742_v33 }
 0x2ed   :  { %2479 = vpow2.f32 %v745_v34 }
 0x2f5   :  { %v2478_v35 = vpop.eup %2477 }
 0x2f6   :  { %v2193_v36 = vadd.f32 -1.0, %v2478_v35 }
 0x2f7   :  { %v2480_v37 = vpop.eup %2479 }
 0x2f8   :  { %v2194_v39 = vadd.f32 -1.0, %v2480_v37  ;;  %v749_v38 = vsel %vm739_vm6, %v733_v28, %v2193_v36 }
 0x2fa   :  { %v750_v42 = vsel %vm740_vm7, %v736_v31, %v2194_v39 }
 0x2fb   :  { %v751_v44 = vpack.c.bf16 %v750_v42, %v749_v38 }
 0x2fd   :  { %2365 = vmatmul.mubr.bf16.vlgmr.msra.gmra.mrb[4].mxu0 %v751_v44 }
 0x2fe   :  { %2788 = shalt.err (!%p2785_p6)  }
 0x2ff   :  { %s2789_s12 = scalar_lea.vmem %s421_s2, 2048  ;;  %p2794_p8 = scmp.lt.s32.totalorder %s421_s2, %s421_s2 }
 0x300   :  { %p2790_p7 = scmp.ne.s32.totalorder %s421_s2, %s2789_s12  ;;  %p2795_p9 = scmp.lt.s32.totalorder %s2789_s12, %s2789_s12 }
 0x302   :  { %p2796_p10 = por %p2795_p9, %p2794_p8 }
 0x304   :  { %p2797_p11 = pnand %p2796_p10, %p2790_p7 }
 0x306   :  { %2800 = shalt.err (!%p2797_p11)  }
 0x307   :  { %423 = dma.hbm_to_vmem [thread:$0]  %s3478_s21, 2048, %s421_s2, [#allocation10 + $0x6] }
 0x308   :  { %s3509_s18 = sld [smem:[#allocation67_spill]] }
 0x30e   :  { %s2801_s4 = scalar_lea.hbm %s3509_s18, 2048 }
 0x30f   :  { %p2802_p12 = scmp.ne.s32.totalorder %s3509_s18, %s2801_s4  ;;  %p2805_p13 = scmp.lt.u32.totalorder %s2801_s4, %s3509_s18 }
 0x311   :  { %p2807_p0 = pnand %p2805_p13, %p2802_p12 }
 0x313   :  { %2810 = shalt.err (!%p2807_p0)  }
 0x314   :  { %s2811_s24 = scalar_lea.vmem %s433_s15, 2048  ;;  %p2816_p2 = scmp.lt.s32.totalorder %s433_s15, %s433_s15 }
 0x315   :  { %p2812_p1 = scmp.ne.s32.totalorder %s433_s15, %s2811_s24  ;;  %p2817_p3 = scmp.lt.s32.totalorder %s2811_s24, %s2811_s24 }
 0x317   :  { %p2818_p4 = por %p2817_p3, %p2816_p2 }
 0x319   :  { %p2819_p5 = pnand %p2818_p4, %p2812_p1 }
 0x31b   :  { %2822 = shalt.err (!%p2819_p5)  }
 0x31c   :  { %435 = dma.hbm_to_vmem [thread:$0]  %s3509_s18, 2048, %s433_s15, [#allocation10 + $0x7]  ;;  %v2195_v45 = vld [vmem:[#allocation16] ss:$0 sm:$0xff] }
 0x31d   :  { %s3510_s11 = sld [smem:[#allocation68_spill]] }
 0x3d0   :  { %v857_v46 = vpop.f32.mrb[4].mxu0 }
 0x3d1   :  { %v858_v47 = vadd.f32 %v2195_v45, %v857_v46  ;;  %v2366_v48 = vpop.f32.mrb[5].mxu0 }
 0x3d2   :  { %v860_v49 = vpop.f32.mrb[6].mxu0 }
 0x3d3   :  { %864 = vst [vmem:[%s3510_s11] sm:$0xff] %v858_v47  ;;  %v861_v50 = vadd.f32 %v2195_v45, %v860_v49  ;;  %v2367_v51 = vpop.f32.mrb[7].mxu0 }
 0x3d5   :  { %865 = vst [vmem:[%s3510_s11 + $0x8] sm:$0xff] %v861_v50  ;;  %v3313_v52 = vpack.c.bf16 %v861_v50, %v858_v47 }
 0x3d6   :  { %2835 = dma.done.wait [#allocation10], 3072 }
 0x3d7   :  { %2836 = vsyncadd [#allocation10], 4294964224  ;;  %927 = vmatprep.mubr.bf16.mxu0 %v2876_v8  ;;  %1013 = vmatprep.mubr.bf16.mxu1 %v2876_v8  ;;  %v872_v53 = vld [vmem:[#allocation2 + $0x8] sm:$0xff]  ;;  %v871_v54 = vld [vmem:[#allocation2] sm:$0xff] }
 0x3d8   :  { %v880_v55 = vld [vmem:[#allocation2 + $0x48] sm:$0xff]  ;;  %895 = vmatprep.subr.bf16.mxu0 %v872_v53  ;;  %v879_v56 = vld [vmem:[#allocation2 + $0x40] sm:$0xff]  ;;  %v874_v63 = vld [vmem:[#allocation2 + $0x18] sm:$0xff] }
 0x3d9   :  { %896 = vmatpush1.bf16.msra.mxu0 %v871_v54  ;;  %v888_v57 = vld [vmem:[#allocation2 + $0x88] sm:$0xff]  ;;  %v875_v59 = vld [vmem:[#allocation2 + $0x20] sm:$0xff]  ;;  %v873_v1 = vld [vmem:[#allocation2 + $0x10] sm:$0xff] }
 0x3da   :  { %897 = vmatprep.subr.bf16.mxu0 %v880_v55  ;;  %v876_v58 = vld [vmem:[#allocation2 + $0x28] sm:$0xff]  ;;  %v887_v61 = vld [vmem:[#allocation2 + $0x80] sm:$0xff]  ;;  %v882_v2 = vld [vmem:[#allocation2 + $0x58] sm:$0xff] }
 0x3db   :  { %981 = vmatprep.subr.bf16.mxu1 %v876_v58  ;;  %v884_v60 = vld [vmem:[#allocation2 + $0x68] sm:$0xff]  ;;  %v883_v62 = vld [vmem:[#allocation2 + $0x60] sm:$0xff]  ;;  %v881_v3 = vld [vmem:[#allocation2 + $0x50] sm:$0xff] }
 0x3dc   :  { %982 = vmatpush1.bf16.msra.mxu1 %v875_v59  ;;  %v892_v0 = vld [vmem:[#allocation2 + $0xa8] sm:$0xff]  ;;  %v890_v4 = vld [vmem:[#allocation2 + $0x98] sm:$0xff]  ;;  %v889_v5 = vld [vmem:[#allocation2 + $0x90] sm:$0xff] }
 0x3dd   :  { %898 = vmatpush1.bf16.msra.mxu0 %v879_v56  ;;  %983 = vmatprep.subr.bf16.mxu1 %v884_v60  ;;  %v878_v6 = vld [vmem:[#allocation2 + $0x38] sm:$0xff]  ;;  %v877_v7 = vld [vmem:[#allocation2 + $0x30] sm:$0xff]  ;;  %v891_v13 = vld [vmem:[#allocation2 + $0xa0] sm:$0xff] }
 0x3de   :  { %899 = vmatprep.subr.bf16.mxu0 %v888_v57  ;;  %v886_v9 = vld [vmem:[#allocation2 + $0x78] sm:$0xff]  ;;  %v885_v10 = vld [vmem:[#allocation2 + $0x70] sm:$0xff] }
 0x3df   :  { %v894_v12 = vld [vmem:[#allocation2 + $0xb8] sm:$0xff]  ;;  %v893_v14 = vld [vmem:[#allocation2 + $0xb0] sm:$0xff] }
 0x3e0   :  { %984 = vmatpush1.bf16.msra.mxu1 %v883_v62 }
 0x3e1   :  { %900 = vmatpush1.bf16.msra.mxu0 %v887_v61  ;;  %985 = vmatprep.subr.bf16.mxu1 %v892_v0 }
 0x3e2   :  { %938 = vmatprep.subr.bf16.mxu0 %v874_v63 }
 0x3e4   :  { %2204 = vmatmul.mubr.msk.bf16.vlgmr.msra.gmra.mrb[8].mxu0 %vm490_vm0, %v3233_v23  ;;  %986 = vmatpush1.bf16.msra.mxu1 %v891_v13 }
 0x3e5   :  { %939 = vmatpush1.bf16.msra.mxu0 %v873_v1  ;;  %970 = vmatprep.mubr.bf16.mxu0 %v2876_v8 }
 0x3e6   :  { %940 = vmatprep.subr.bf16.mxu0 %v882_v2 }
 0x3e7   :  { %2206 = vmatmul.mubr.msk.bf16.vlgmr.msra.gmra.mrb[4].mxu1 %vm490_vm0, %v3233_v23 }
 0x3e9   :  { %941 = vmatpush1.bf16.msra.mxu0 %v881_v3 }
 0x3ea   :  { %942 = vmatprep.subr.bf16.mxu0 %v890_v4 }
 0x3ed   :  { %943 = vmatpush1.bf16.msra.mxu0 %v889_v5 }
 0x3ee   :  { %1024 = vmatprep.subr.bf16.mxu0 %v878_v6 }
 0x3f0   :  { %2205 = vmatmul.mubr.msk.bf16.vlgmr.msra.gmra.mrb[12].mxu0 %vm490_vm0, %v3233_v23 }
 0x3f1   :  { %1025 = vmatpush1.bf16.msra.mxu0 %v877_v7  ;;  %1056 = vmatprep.mubr.bf16.mxu0 %v2876_v8 }
 0x3f2   :  { %1026 = vmatprep.subr.bf16.mxu0 %v886_v9 }
 0x3f5   :  { %1027 = vmatpush1.bf16.msra.mxu0 %v885_v10 }
 0x3f6   :  { %1028 = vmatprep.subr.bf16.mxu0 %v894_v12 }
 0x3f9   :  { %1029 = vmatpush1.bf16.msra.mxu0 %v893_v14 }
 0x3fc   :  { %2207 = vmatmul.mubr.msk.bf16.vlgmr.msra.gmra.mrb[16].mxu0 %vm490_vm0, %v3233_v23 }
 0x4b7   :  { %v3327_v15 = vpop.f32.mrb[8].mxu0 }
 0x4b8   :  { %v3329_v16 = vpop.f32.mrb[9].mxu0 }
 0x4b9   :  { %v3331_v17 = vpop.f32.mrb[10].mxu0 }
 0x4ba   :  { %v3333_v18 = vpop.f32.mrb[11].mxu0 }
 0x4bb   :  { %2837 = dma.done.wait [#allocation10 + $0x1], 4096 }
 0x4bc   :  { %2838 = vsyncadd [#allocation10 + $0x1], 4294963200  ;;  %1135 = vmatprep.mubr.bf16.mxu1 %v2876_v8  ;;  %1178 = vmatprep.mubr.bf16.mxu0 %v2876_v8  ;;  %v1072_v19 = vld [vmem:[#allocation3 + $0x8] sm:$0xff]  ;;  %v1074_v20 = vld [vmem:[#allocation3 + $0x18] sm:$0xff]  ;;  %v1209_v55 = vsub.s32 2, %v3242_v40  ;;  %v1213_v57 = vsub.s32 3, %v3242_v40 }
 0x4bd   :  { %v1071_v21 = vld [vmem:[#allocation3] sm:$0xff]  ;;  %1103 = vmatprep.subr.bf16.mxu1 %v1072_v19  ;;  %1146 = vmatprep.subr.bf16.mxu0 %v1074_v20  ;;  %v1073_v23 = vld [vmem:[#allocation3 + $0x10] sm:$0xff]  ;;  %v1076_v22 = vld [vmem:[#allocation3 + $0x28] sm:$0xff] }
 0x4be   :  { %v1078_v24 = vld [vmem:[#allocation3 + $0x38] sm:$0xff]  ;;  %1104 = vmatpush1.bf16.msra.mxu1 %v1071_v21  ;;  %1147 = vmatpush1.bf16.msra.mxu0 %v1073_v23  ;;  %v1075_v25 = vld [vmem:[#allocation3 + $0x20] sm:$0xff]  ;;  %v1077_v26 = vld [vmem:[#allocation3 + $0x30] sm:$0xff] }
 0x4bf   :  { %1105 = vmatprep.subr.bf16.mxu1 %v1076_v22  ;;  %1148 = vmatprep.subr.bf16.mxu0 %v1078_v24  ;;  %v1080_v27 = vld [vmem:[#allocation3 + $0x48] sm:$0xff]  ;;  %v1082_v28 = vld [vmem:[#allocation3 + $0x58] sm:$0xff]  ;;  %v1079_v29 = vld [vmem:[#allocation3 + $0x40] sm:$0xff] }
 0x4c0   :  { %v1081_v30 = vld [vmem:[#allocation3 + $0x50] sm:$0xff]  ;;  %v1084_v31 = vld [vmem:[#allocation3 + $0x68] sm:$0xff]  ;;  %v1086_v32 = vld [vmem:[#allocation3 + $0x78] sm:$0xff] }
 0x4c1   :  { %v1083_v33 = vld [vmem:[#allocation3 + $0x60] sm:$0xff]  ;;  %v1085_v34 = vld [vmem:[#allocation3 + $0x70] sm:$0xff]  ;;  %v1088_v35 = vld [vmem:[#allocation3 + $0x88] sm:$0xff] }
 0x4c2   :  { %1106 = vmatpush1.bf16.msra.mxu1 %v1075_v25  ;;  %1149 = vmatpush1.bf16.msra.mxu0 %v1077_v26  ;;  %v1090_v36 = vld [vmem:[#allocation3 + $0x98] sm:$0xff]  ;;  %v1087_v37 = vld [vmem:[#allocation3 + $0x80] sm:$0xff]  ;;  %v1089_v39 = vld [vmem:[#allocation3 + $0x90] sm:$0xff] }
 0x4c3   :  { %1107 = vmatprep.subr.bf16.mxu1 %v1080_v27  ;;  %1150 = vmatprep.subr.bf16.mxu0 %v1082_v28  ;;  %v1092_v38 = vld [vmem:[#allocation3 + $0xa8] sm:$0xff]  ;;  %v1094_v42 = vld [vmem:[#allocation3 + $0xb8] sm:$0xff]  ;;  %v1091_v44 = vld [vmem:[#allocation3 + $0xa0] sm:$0xff] }
 0x4c4   :  { %v1093_v45 = vld [vmem:[#allocation3 + $0xb0] sm:$0xff]  ;;  %v1096_v46 = vld [vmem:[#allocation3 + $0xc8] sm:$0xff]  ;;  %v1098_v47 = vld [vmem:[#allocation3 + $0xd8] sm:$0xff] }
 0x4c5   :  { %v1095_v48 = vld [vmem:[#allocation3 + $0xc0] sm:$0xff]  ;;  %v1097_v49 = vld [vmem:[#allocation3 + $0xd0] sm:$0xff]  ;;  %v1100_v50 = vld [vmem:[#allocation3 + $0xe8] sm:$0xff] }
 0x4c6   :  { %1108 = vmatpush1.bf16.msra.mxu1 %v1079_v29  ;;  %1151 = vmatpush1.bf16.msra.mxu0 %v1081_v30  ;;  %v1102_v51 = vld [vmem:[#allocation3 + $0xf8] sm:$0xff]  ;;  %v1099_v53 = vld [vmem:[#allocation3 + $0xe0] sm:$0xff]  ;;  %v1101_v54 = vld [vmem:[#allocation3 + $0xf0] sm:$0xff] }
 0x4c7   :  { %1109 = vmatprep.subr.bf16.mxu1 %v1084_v31  ;;  %1152 = vmatprep.subr.bf16.mxu0 %v1086_v32  ;;  %v1197_v56 = vld [vmem:[#allocation18] sm:$0xf] }
 0x4c8   :  { %v1210_v58 = vrot.slane %v1197_v56, %v1209_v55  ;;  %v1214_v59 = vrot.slane %v1197_v56, %v1213_v57  ;;  %v1202_v60 = vrot.slane %v1197_v56, %v3245_v41  ;;  %v1206_v63 = vrot.slane %v1197_v56, %v3251_v43 }
 0x4ca   :  { %1110 = vmatpush1.bf16.msra.mxu1 %v1083_v33  ;;  %1153 = vmatpush1.bf16.msra.mxu0 %v1085_v34 }
 0x4cb   :  { %1111 = vmatprep.subr.bf16.mxu1 %v1088_v35  ;;  %1154 = vmatprep.subr.bf16.mxu0 %v1090_v36 }
 0x4ce   :  { %1112 = vmatpush1.bf16.msra.mxu1 %v1087_v37  ;;  %1155 = vmatpush1.bf16.msra.mxu0 %v1089_v39 }
 0x4cf   :  { %1113 = vmatprep.subr.bf16.mxu1 %v1092_v38  ;;  %1156 = vmatprep.subr.bf16.mxu0 %v1094_v42 }
 0x4d2   :  { %1114 = vmatpush1.bf16.msra.mxu1 %v1091_v44  ;;  %1157 = vmatpush1.bf16.msra.mxu0 %v1093_v45 }
 0x4d3   :  { %1115 = vmatprep.subr.bf16.mxu1 %v1096_v46  ;;  %1158 = vmatprep.subr.bf16.mxu0 %v1098_v47 }
 0x4d6   :  { %1116 = vmatpush1.bf16.msra.mxu1 %v1095_v48  ;;  %1159 = vmatpush1.bf16.msra.mxu0 %v1097_v49 }
 0x4d7   :  { %1117 = vmatprep.subr.bf16.mxu1 %v1100_v50  ;;  %1160 = vmatprep.subr.bf16.mxu0 %v1102_v51 }
 0x4da   :  { %1118 = vmatpush1.bf16.msra.mxu1 %v1099_v53  ;;  %1161 = vmatpush1.bf16.msra.mxu0 %v1101_v54 }
 0x4dd   :  { %1136 = vmatmul.mubr.bf16.vlgmr.msra.gmra.mrb[8].mxu1 %v3313_v52  ;;  %1179 = vmatmul.mubr.bf16.vlgmr.msra.gmra.mrb[12].mxu0 %v3313_v52 }
 0x5b0   :  { %v1137_v61 = vpop.f32.mrb[8].mxu1  ;;  %v1180_v62 = vpop.f32.mrb[12].mxu0 }
 0x5b1   :  { %v1189_v0 = vadd.f32 %v1137_v61, %v3327_v15  ;;  %v1221_v52 = vadd.f32 %v1210_v58, %v1180_v62  ;;  %v1139_v1 = vpop.f32.mrb[9].mxu1  ;;  %v1182_v2 = vpop.f32.mrb[13].mxu0 }
 0x5b2   :  { %v1190_v3 = vadd.f32 %v1139_v1, %v3329_v16  ;;  %v3349_v4 = vadd.f32 %v1214_v59, %v1182_v2  ;;  %v1141_v5 = vpop.f32.mrb[10].mxu1  ;;  %v1184_v6 = vpop.f32.mrb[14].mxu0 }
 0x5b3   :  { %v1219_v7 = vadd.f32 %v1202_v60, %v1189_v0  ;;  %v1237_v9 = vmin.f32 %v1221_v52, 0.0  ;;  %v1193_v10 = vadd.f32 %v1141_v5, %v3331_v17  ;;  %v1143_v12 = vpop.f32.mrb[11].mxu1  ;;  %v1186_v13 = vpop.f32.mrb[15].mxu0  ;;  %v1225_v20 = vadd.f32 %v1210_v58, %v1184_v6 }
 0x5b4   :  { %v1220_v14 = vadd.f32 %v1206_v63, %v1190_v3  ;;  %v1238_v19 = vmin.f32 %v3349_v4, 0.0  ;;  %v1194_v28 = vadd.f32 %v1143_v12, %v3333_v18  ;;  %v1226_v29 = vadd.f32 %v1214_v59, %v1186_v13 }
 0x5b5   :  { %v1235_v15 = vmin.f32 %v1219_v7, 0.0  ;;  %v1247_v21 = vmul.f32 1.442695, %v1237_v9  ;;  %v1223_v23 = vadd.f32 %v1202_v60, %v1193_v10  ;;  %v1241_v27 = vmin.f32 %v1225_v20, 0.0 }
 0x5b6   :  { %v1236_v22 = vmin.f32 %v1220_v14, 0.0  ;;  %v1249_v24 = vmul.f32 1.442695, %v1238_v19  ;;  %v1224_v31 = vadd.f32 %v1206_v63, %v1194_v28  ;;  %v1242_v32 = vmin.f32 %v1226_v29, 0.0 }
 0x5b7   :  { %v1243_v16 = vmul.f32 1.442695, %v1235_v15  ;;  %2481 = vpow2.f32 %v1247_v21  ;;  %v1239_v25 = vmin.f32 %v1223_v23, 0.0  ;;  %v1255_v30 = vmul.f32 1.442695, %v1241_v27 }
 0x5b8   :  { %v1245_v26 = vmul.f32 1.442695, %v1236_v22  ;;  %2483 = vpow2.f32 %v1249_v24  ;;  %v1240_v33 = vmin.f32 %v1224_v31, 0.0  ;;  %v1257_v34 = vmul.f32 1.442695, %v1242_v32 }
 0x5b9   :  { %2485 = vpow2.f32 %v1243_v16  ;;  %v1251_v17 = vmul.f32 1.442695, %v1239_v25  ;;  %vm1227_vm8 = vcmp.gt.f32.partialorder %v1219_v7, 0.0  ;;  %vm1229_vm9 = vcmp.gt.f32.partialorder %v1221_v52, 0.0 }
 0x5ba   :  { %2487 = vpow2.f32 %v1245_v26  ;;  %v1253_v35 = vmul.f32 1.442695, %v1240_v33  ;;  %vm1231_vm10 = vcmp.gt.f32.partialorder %v1223_v23, 0.0  ;;  %vm1233_vm11 = vcmp.gt.f32.partialorder %v1225_v20, 0.0 }
 0x5bb   :  { %2489 = vpow2.f32 %v1251_v17  ;;  %vm1230_vm12 = vcmp.gt.f32.partialorder %v3349_v4, 0.0  ;;  %vm1234_vm13 = vcmp.gt.f32.partialorder %v1226_v29, 0.0  ;;  %vm1228_vm14 = vcmp.gt.f32.partialorder %v1220_v14, 0.0 }
 0x5bc   :  { %2491 = vpow2.f32 %v1255_v30  ;;  %vm1232_vm15 = vcmp.gt.f32.partialorder %v1224_v31, 0.0 }
 0x5bd   :  { %2493 = vpow2.f32 %v1257_v34 }
 0x5be   :  { %2495 = vpow2.f32 %v1253_v35 }
 0x5c1   :  { %v2482_v36 = vpop.eup %2481 }
 0x5c2   :  { %v2484_v37 = vpop.eup %2483  ;;  %v2210_v44 = vadd.f32 -1.0, %v2482_v36 }
 0x5c3   :  { %v2486_v39 = vpop.eup %2485  ;;  %v2211_v49 = vadd.f32 -1.0, %v2484_v37 }
 0x5c4   :  { %v2488_v38 = vpop.eup %2487  ;;  %v2208_v42 = vadd.f32 -1.0, %v2486_v39  ;;  %v3358_v53 = vsel %vm1229_vm9, %v1221_v52, %v2210_v44 }
 0x5c5   :  { %v2490_v18 = vpop.eup %2489  ;;  %v2209_v54 = vadd.f32 -1.0, %v2488_v38  ;;  %v3368_v63 = vsel %vm1230_vm12, %v3349_v4, %v2211_v49 }
 0x5c6   :  { %v2492_v45 = vpop.eup %2491  ;;  %v2212_v46 = vadd.f32 -1.0, %v2490_v18  ;;  %v3354_v48 = vsel %vm1227_vm8, %v1219_v7, %v2208_v42 }
 0x5c7   :  { %v2214_v47 = vadd.f32 -1.0, %v2492_v45  ;;  %v2494_v51 = vpop.eup %2493  ;;  %v1268_v52 = vsel %vm1228_vm14, %v1220_v14, %v2209_v54 }
 0x5c8   :  { %v3356_v50 = vsel %vm1231_vm10, %v1223_v23, %v2212_v46  ;;  %v2496_v59 = vpop.eup %2495  ;;  %v2215_v61 = vadd.f32 -1.0, %v2494_v51 }
 0x5c9   :  { %v1275_v56 = vpack.c.bf16 %v3356_v50, %v3354_v48  ;;  %v3362_v58 = vsel %vm1233_vm11, %v1225_v20, %v2214_v47  ;;  %v2213_v62 = vadd.f32 -1.0, %v2496_v59 }
 0x5ca   :  { %v1277_v60 = vpack.c.bf16 %v3362_v58, %v3358_v53  ;;  %v3370_v0 = vsel %vm1234_vm13, %v1226_v29, %v2215_v61 }
 0x5cb   :  { %v1272_v1 = vsel %vm1232_vm15, %v1224_v31, %v2213_v62  ;;  %v1278_v2 = vpack.c.bf16 %v3370_v0, %v3368_v63 }
 0x5cc   :  { %v1276_v3 = vpack.c.bf16 %v1272_v1, %v1268_v52 }
 0x5cd   :  { %2839 = dma.done.wait [#allocation10 + $0x3], 8192 }
 0x5ce   :  { %2840 = vsyncadd [#allocation10 + $0x3], 4294959104  ;;  %1391 = vmatprep.mubr.bf16.mxu1 %v1276_v3  ;;  %v1284_v5 = vld [vmem:[#allocation5 + $0x8] sm:$0xff]  ;;  %v1283_v6 = vld [vmem:[#allocation5] sm:$0xff] }
 0x5cf   :  { %v1286_v7 = vld [vmem:[#allocation5 + $0x18] sm:$0xff]  ;;  %1359 = vmatprep.subr.bf16.mxu1 %v1284_v5  ;;  %v1285_v4 = vld [vmem:[#allocation5 + $0x10] sm:$0xff]  ;;  %v1288_v9 = vld [vmem:[#allocation5 + $0x28] sm:$0xff] }
 0x5d0   :  { %1360 = vmatpush1.bf16.msra.mxu1 %v1283_v6  ;;  %v1287_v10 = vld [vmem:[#allocation5 + $0x20] sm:$0xff]  ;;  %v1290_v12 = vld [vmem:[#allocation5 + $0x38] sm:$0xff]  ;;  %v1289_v13 = vld [vmem:[#allocation5 + $0x30] sm:$0xff] }
 0x5d1   :  { %1361 = vmatprep.subr.bf16.mxu1 %v1286_v7  ;;  %v1292_v14 = vld [vmem:[#allocation5 + $0x48] sm:$0xff]  ;;  %v1291_v19 = vld [vmem:[#allocation5 + $0x40] sm:$0xff]  ;;  %v1294_v20 = vld [vmem:[#allocation5 + $0x58] sm:$0xff] }
 0x5d2   :  { %v1293_v15 = vld [vmem:[#allocation5 + $0x50] sm:$0xff]  ;;  %v1296_v21 = vld [vmem:[#allocation5 + $0x68] sm:$0xff]  ;;  %v1295_v23 = vld [vmem:[#allocation5 + $0x60] sm:$0xff] }
 0x5d3   :  { %v1298_v22 = vld [vmem:[#allocation5 + $0x78] sm:$0xff]  ;;  %v1297_v24 = vld [vmem:[#allocation5 + $0x70] sm:$0xff]  ;;  %v1300_v16 = vld [vmem:[#allocation5 + $0x88] sm:$0xff] }
 0x5d4   :  { %1362 = vmatpush1.bf16.msra.mxu1 %v1285_v4  ;;  %v1299_v25 = vld [vmem:[#allocation5 + $0x80] sm:$0xff]  ;;  %v1302_v26 = vld [vmem:[#allocation5 + $0x98] sm:$0xff]  ;;  %v1301_v27 = vld [vmem:[#allocation5 + $0x90] sm:$0xff] }
 0x5d5   :  { %1363 = vmatprep.subr.bf16.mxu1 %v1288_v9  ;;  %v1304_v28 = vld [vmem:[#allocation5 + $0xa8] sm:$0xff]  ;;  %v1303_v17 = vld [vmem:[#allocation5 + $0xa0] sm:$0xff]  ;;  %v1306_v29 = vld [vmem:[#allocation5 + $0xb8] sm:$0xff] }
 0x5d6   :  { %v1305_v30 = vld [vmem:[#allocation5 + $0xb0] sm:$0xff]  ;;  %v1308_v31 = vld [vmem:[#allocation5 + $0xc8] sm:$0xff]  ;;  %v1307_v32 = vld [vmem:[#allocation5 + $0xc0] sm:$0xff] }
 0x5d7   :  { %v1310_v33 = vld [vmem:[#allocation5 + $0xd8] sm:$0xff]  ;;  %v1309_v34 = vld [vmem:[#allocation5 + $0xd0] sm:$0xff]  ;;  %v1312_v35 = vld [vmem:[#allocation5 + $0xe8] sm:$0xff] }
 0x5d8   :  { %1364 = vmatpush1.bf16.msra.mxu1 %v1287_v10  ;;  %v1311_v36 = vld [vmem:[#allocation5 + $0xe0] sm:$0xff]  ;;  %v1314_v37 = vld [vmem:[#allocation5 + $0xf8] sm:$0xff]  ;;  %v1313_v39 = vld [vmem:[#allocation5 + $0xf0] sm:$0xff] }
 0x5d9   :  { %1365 = vmatprep.subr.bf16.mxu1 %v1290_v12  ;;  %v1316_v38 = vld [vmem:[#allocation5 + $0x108] sm:$0xff]  ;;  %v1315_v42 = vld [vmem:[#allocation5 + $0x100] sm:$0xff]  ;;  %v1318_v18 = vld [vmem:[#allocation5 + $0x118] sm:$0xff] }
 0x5da   :  { %v1317_v44 = vld [vmem:[#allocation5 + $0x110] sm:$0xff]  ;;  %v1320_v45 = vld [vmem:[#allocation5 + $0x128] sm:$0xff]  ;;  %v1319_v46 = vld [vmem:[#allocation5 + $0x120] sm:$0xff] }
 0x5db   :  { %v1322_v47 = vld [vmem:[#allocation5 + $0x138] sm:$0xff]  ;;  %v1321_v49 = vld [vmem:[#allocation5 + $0x130] sm:$0xff]  ;;  %v1324_v51 = vld [vmem:[#allocation5 + $0x148] sm:$0xff] }
 0x5dc   :  { %1366 = vmatpush1.bf16.msra.mxu1 %v1289_v13  ;;  %v1323_v48 = vld [vmem:[#allocation5 + $0x140] sm:$0xff]  ;;  %v1326_v50 = vld [vmem:[#allocation5 + $0x158] sm:$0xff]  ;;  %v1325_v54 = vld [vmem:[#allocation5 + $0x150] sm:$0xff] }
 0x5dd   :  { %1367 = vmatprep.subr.bf16.mxu1 %v1292_v14  ;;  %v1327_v59 = vld [vmem:[#allocation5 + $0x160] sm:$0xff]  ;;  %v1330_v61 = vld [vmem:[#allocation5 + $0x178] sm:$0xff]  ;;  %v1329_v62 = vld [vmem:[#allocation5 + $0x170] sm:$0xff] }
 0x5de   :  { %v1332_v63 = vld [vmem:[#allocation5 + $0x188] sm:$0xff]  ;;  %v1331_v0 = vld [vmem:[#allocation5 + $0x180] sm:$0xff]  ;;  %v1334_v52 = vld [vmem:[#allocation5 + $0x198] sm:$0xff] }
 0x5df   :  { %v1333_v1 = vld [vmem:[#allocation5 + $0x190] sm:$0xff]  ;;  %v1335_v3 = vld [vmem:[#allocation5 + $0x1a0] sm:$0xff]  ;;  %v1338_v5 = vld [vmem:[#allocation5 + $0x1b8] sm:$0xff] }
 0x5e0   :  { %1368 = vmatpush1.bf16.msra.mxu1 %v1291_v19  ;;  %v1337_v6 = vld [vmem:[#allocation5 + $0x1b0] sm:$0xff]  ;;  %v1340_v7 = vld [vmem:[#allocation5 + $0x1c8] sm:$0xff]  ;;  %v1339_v4 = vld [vmem:[#allocation5 + $0x1c0] sm:$0xff] }
 0x5e1   :  { %1369 = vmatprep.subr.bf16.mxu1 %v1294_v20  ;;  %v1342_v9 = vld [vmem:[#allocation5 + $0x1d8] sm:$0xff]  ;;  %v1341_v10 = vld [vmem:[#allocation5 + $0x1d0] sm:$0xff]  ;;  %v1344_v12 = vld [vmem:[#allocation5 + $0x1e8] sm:$0xff] }
 0x5e2   :  { %v1343_v13 = vld [vmem:[#allocation5 + $0x1e0] sm:$0xff]  ;;  %v1346_v14 = vld [vmem:[#allocation5 + $0x1f8] sm:$0xff]  ;;  %v1345_v19 = vld [vmem:[#allocation5 + $0x1f0] sm:$0xff] }
 0x5e3   :  { %v1347_v20 = vld [vmem:[#allocation19] sm:$0x3] }
 0x5e4   :  { %1370 = vmatpush1.bf16.msra.mxu1 %v1293_v15  ;;  %v1352_v15 = vrot.slane %v1347_v20, %v3245_v41 }
 0x5e5   :  { %1371 = vmatprep.subr.bf16.mxu1 %v1296_v21  ;;  %v1356_v21 = vrot.slane %v1347_v20, %v3251_v43 }
 0x5e8   :  { %1372 = vmatpush1.bf16.msra.mxu1 %v1295_v23 }
 0x5e9   :  { %1373 = vmatprep.subr.bf16.mxu1 %v1298_v22 }
 0x5ec   :  { %1374 = vmatpush1.bf16.msra.mxu1 %v1297_v24 }
 0x5ed   :  { %1375 = vmatprep.subr.bf16.mxu1 %v1300_v16 }
 0x5f0   :  { %1376 = vmatpush1.bf16.msra.mxu1 %v1299_v25 }
 0x5f1   :  { %1377 = vmatprep.subr.bf16.mxu1 %v1302_v26 }
 0x5f4   :  { %1378 = vmatpush1.bf16.msra.mxu1 %v1301_v27 }
 0x5f5   :  { %1379 = vmatprep.subr.bf16.mxu1 %v1304_v28 }
 0x5f8   :  { %1380 = vmatpush1.bf16.msra.mxu1 %v1303_v17 }
 0x5f9   :  { %1381 = vmatprep.subr.bf16.mxu1 %v1306_v29 }
 0x5fc   :  { %1382 = vmatpush1.bf16.msra.mxu1 %v1305_v30 }
 0x5fd   :  { %1383 = vmatprep.subr.bf16.mxu1 %v1308_v31 }
 0x600   :  { %1384 = vmatpush1.bf16.msra.mxu1 %v1307_v32 }
 0x601   :  { %1385 = vmatprep.subr.bf16.mxu1 %v1310_v33 }
 0x604   :  { %1386 = vmatpush1.bf16.msra.mxu1 %v1309_v34 }
 0x605   :  { %1387 = vmatprep.subr.bf16.mxu1 %v1312_v35 }
 0x608   :  { %1388 = vmatpush1.bf16.msra.mxu1 %v1311_v36 }
 0x609   :  { %1389 = vmatprep.subr.bf16.mxu1 %v1314_v37 }
 0x60c   :  { %1390 = vmatpush1.bf16.msra.mxu1 %v1313_v39 }
 0x60d   :  { %1402 = vmatprep.subr.bf16.mxu1 %v1316_v38 }
 0x60f   :  { %1392 = vmatmul.mubr.bf16.vlgmr.msra.gmra.mrb[12].mxu1 %v1275_v56  ;;  %v1328_v56 = vld [vmem:[#allocation5 + $0x168] sm:$0xff] }
 0x610   :  { %1403 = vmatpush1.bf16.msra.mxu1 %v1315_v42  ;;  %1434 = vmatprep.mubr.bf16.mxu1 %v1278_v2  ;;  %v1336_v2 = vld [vmem:[#allocation5 + $0x1a8] sm:$0xff] }
 0x611   :  { %1404 = vmatprep.subr.bf16.mxu1 %v1318_v18 }
 0x614   :  { %1405 = vmatpush1.bf16.msra.mxu1 %v1317_v44 }
 0x615   :  { %1406 = vmatprep.subr.bf16.mxu1 %v1320_v45 }
 0x618   :  { %1407 = vmatpush1.bf16.msra.mxu1 %v1319_v46 }
 0x619   :  { %1408 = vmatprep.subr.bf16.mxu1 %v1322_v47 }
 0x61c   :  { %1409 = vmatpush1.bf16.msra.mxu1 %v1321_v49 }
 0x61d   :  { %1410 = vmatprep.subr.bf16.mxu1 %v1324_v51 }
 0x620   :  { %1411 = vmatpush1.bf16.msra.mxu1 %v1323_v48 }
 0x621   :  { %1412 = vmatprep.subr.bf16.mxu1 %v1326_v50 }
 0x624   :  { %1413 = vmatpush1.bf16.msra.mxu1 %v1325_v54 }
 0x625   :  { %1414 = vmatprep.subr.bf16.mxu1 %v1328_v56 }
 0x628   :  { %1415 = vmatpush1.bf16.msra.mxu1 %v1327_v59 }
 0x629   :  { %1416 = vmatprep.subr.bf16.mxu1 %v1330_v61 }
 0x62c   :  { %1417 = vmatpush1.bf16.msra.mxu1 %v1329_v62 }
 0x62d   :  { %1418 = vmatprep.subr.bf16.mxu1 %v1332_v63 }
 0x630   :  { %1419 = vmatpush1.bf16.msra.mxu1 %v1331_v0 }
 0x631   :  { %1420 = vmatprep.subr.bf16.mxu1 %v1334_v52 }
 0x634   :  { %1421 = vmatpush1.bf16.msra.mxu1 %v1333_v1 }
 0x635   :  { %1422 = vmatprep.subr.bf16.mxu1 %v1336_v2 }
 0x638   :  { %1423 = vmatpush1.bf16.msra.mxu1 %v1335_v3 }
 0x639   :  { %1424 = vmatprep.subr.bf16.mxu1 %v1338_v5 }
 0x63c   :  { %1425 = vmatpush1.bf16.msra.mxu1 %v1337_v6 }
 0x63d   :  { %1426 = vmatprep.subr.bf16.mxu1 %v1340_v7 }
 0x640   :  { %1427 = vmatpush1.bf16.msra.mxu1 %v1339_v4 }
 0x641   :  { %1428 = vmatprep.subr.bf16.mxu1 %v1342_v9 }
 0x644   :  { %1429 = vmatpush1.bf16.msra.mxu1 %v1341_v10 }
 0x645   :  { %1430 = vmatprep.subr.bf16.mxu1 %v1344_v12 }
 0x648   :  { %1431 = vmatpush1.bf16.msra.mxu1 %v1343_v13 }
 0x649   :  { %1432 = vmatprep.subr.bf16.mxu1 %v1346_v14 }
 0x64c   :  { %1433 = vmatpush1.bf16.msra.mxu1 %v1345_v19 }
 0x64f   :  { %1435 = vmatmul.mubr.bf16.vlgmr.msra.gmra.mrb[12].mxu1 %v1277_v60 }
 0x722   :  { %v1436_v23 = vpop.f32.mrb[12].mxu1 }
 0x723   :  { %v2372_v22 = vadd.f32 %v1436_v23, %v1352_v15  ;;  %v1438_v24 = vpop.f32.mrb[13].mxu1 }
 0x724   :  { %v2373_v16 = vadd.f32 %v1438_v24, %v1356_v21  ;;  %v1440_v25 = vpop.f32.mrb[14].mxu1 }
 0x725   :  { %v1449_v26 = vmin.f32 %v2372_v22, 0.0  ;;  %v2374_v27 = vadd.f32 %v1440_v25, %v1352_v15  ;;  %v1442_v28 = vpop.f32.mrb[15].mxu1  ;;  %vm1445_vm0 = vcmp.gt.f32.partialorder %v2372_v22, 0.0 }
 0x726   :  { %v1450_v17 = vmin.f32 %v2373_v16, 0.0  ;;  %v2375_v29 = vadd.f32 %v1442_v28, %v1356_v21  ;;  %vm1446_vm2 = vcmp.gt.f32.partialorder %v2373_v16, 0.0 }
 0x727   :  { %v1453_v30 = vmul.f32 1.442695, %v1449_v26  ;;  %v1451_v31 = vmin.f32 %v2374_v27, 0.0  ;;  %vm1447_vm1 = vcmp.gt.f32.partialorder %v2374_v27, 0.0 }
 0x728   :  { %v1455_v32 = vmul.f32 1.442695, %v1450_v17  ;;  %v1452_v53 = vmin.f32 %v2375_v29, 0.0  ;;  %vm1448_vm3 = vcmp.gt.f32.partialorder %v2375_v29, 0.0 }
 0x729   :  { %2497 = vpow2.f32 %v1453_v30  ;;  %v1457_v58 = vmul.f32 1.442695, %v1451_v31 }
 0x72a   :  { %2499 = vpow2.f32 %v1455_v32  ;;  %v1459_v60 = vmul.f32 1.442695, %v1452_v53 }
 0x72b   :  { %2501 = vpow2.f32 %v1457_v58 }
 0x72c   :  { %2503 = vpow2.f32 %v1459_v60 }
 0x733   :  { %v2498_v33 = vpop.eup %2497 }
 0x734   :  { %v2500_v34 = vpop.eup %2499  ;;  %v2216_v35 = vadd.f32 -1.0, %v2498_v33 }
 0x735   :  { %v2502_v36 = vpop.eup %2501  ;;  %v2217_v37 = vadd.f32 -1.0, %v2500_v34 }
 0x736   :  { %v2504_v39 = vpop.eup %2503  ;;  %v2218_v38 = vadd.f32 -1.0, %v2502_v36  ;;  %v1465_v18 = vsel %vm1445_vm0, %v2372_v22, %v2216_v35 }
 0x737   :  { %v2219_v42 = vadd.f32 -1.0, %v2504_v39  ;;  %v1466_v45 = vsel %vm1446_vm2, %v2373_v16, %v2217_v37 }
 0x738   :  { %v1467_v44 = vsel %vm1447_vm1, %v2374_v27, %v2218_v38 }
 0x739   :  { %v1469_v46 = vpack.c.bf16 %v1467_v44, %v1465_v18  ;;  %v1468_v47 = vsel %vm1448_vm3, %v2375_v29, %v2219_v42 }
 0x73a   :  { %v1470_v49 = vpack.c.bf16 %v1468_v47, %v1466_v45 }
 0x73b   :  { %2841 = dma.done.wait [#allocation10 + $0x4], 2048 }
 0x73c   :  { %2842 = vsyncadd [#allocation10 + $0x4], 4294965248  ;;  %1530 = vmatprep.mubr.bf16.mxu0 %v1470_v49  ;;  %v1483_v51 = vld [vmem:[#allocation6 + $0x40] sm:$0xff]  ;;  %v1484_v50 = vld [vmem:[#allocation6 + $0x48] sm:$0xff] }
 0x73d   :  { %v1475_v48 = vld [vmem:[#allocation6] sm:$0xff]  ;;  %2282 = vmatprep.subr.bf16.mxu0 %v1483_v51  ;;  %v1476_v54 = vld [vmem:[#allocation6 + $0x8] sm:$0xff]  ;;  %v1485_v56 = vld [vmem:[#allocation6 + $0x50] sm:$0xff] }
 0x73e   :  { %2283 = vmatpush3.bf16.msra.mxu0 %v1475_v48  ;;  %v1477_v59 = vld [vmem:[#allocation6 + $0x10] sm:$0xff]  ;;  %v1486_v61 = vld [vmem:[#allocation6 + $0x58] sm:$0xff]  ;;  %v1487_v63 = vld [vmem:[#allocation6 + $0x60] sm:$0xff] }
 0x73f   :  { %2284 = vmatprep.subr.bf16.mxu0 %v1484_v50  ;;  %v1478_v62 = vld [vmem:[#allocation6 + $0x18] sm:$0xff]  ;;  %v1479_v0 = vld [vmem:[#allocation6 + $0x20] sm:$0xff]  ;;  %v1488_v52 = vld [vmem:[#allocation6 + $0x68] sm:$0xff] }
 0x740   :  { %v1480_v1 = vld [vmem:[#allocation6 + $0x28] sm:$0xff]  ;;  %v1489_v2 = vld [vmem:[#allocation6 + $0x70] sm:$0xff]  ;;  %v1490_v5 = vld [vmem:[#allocation6 + $0x78] sm:$0xff] }
 0x741   :  { %v1481_v3 = vld [vmem:[#allocation6 + $0x30] sm:$0xff]  ;;  %v1482_v6 = vld [vmem:[#allocation6 + $0x38] sm:$0xff] }
 0x742   :  { %2285 = vmatpush3.bf16.msra.mxu0 %v1476_v54  ;;  %v2220_v4 = vld [vmem:[#allocation21] ss:$0 sm:$0xff] }
 0x743   :  { %2286 = vmatprep.subr.bf16.mxu0 %v1485_v56 }
 0x746   :  { %2287 = vmatpush3.bf16.msra.mxu0 %v1477_v59 }
 0x747   :  { %2288 = vmatprep.subr.bf16.mxu0 %v1486_v61 }
 0x74a   :  { %2289 = vmatpush3.bf16.msra.mxu0 %v1478_v62 }
 0x74b   :  { %2290 = vmatprep.subr.bf16.mxu0 %v1487_v63 }
 0x74e   :  { %2291 = vmatpush3.bf16.msra.mxu0 %v1479_v0 }
 0x74f   :  { %2292 = vmatprep.subr.bf16.mxu0 %v1488_v52 }
 0x752   :  { %2293 = vmatpush3.bf16.msra.mxu0 %v1480_v1 }
 0x753   :  { %2294 = vmatprep.subr.bf16.mxu0 %v1489_v2 }
 0x756   :  { %2295 = vmatpush3.bf16.msra.mxu0 %v1481_v3 }
 0x757   :  { %2296 = vmatprep.subr.bf16.mxu0 %v1490_v5 }
 0x75a   :  { %2297 = vmatpush3.bf16.msra.mxu0 %v1482_v6 }
 0x75d   :  { %1531 = vmatmul.mubr.bf16.vlgmr.msra.gmra.mrb[20].mxu0 %v1469_v46 }
 0x830   :  { %v2298_v7 = vpop.f32.mrb[20].mxu0 }
 0x831   :  { %v2299_v9 = vpop.f32.mrb[21].mxu0 }
 0x832   :  { %v2300_v10 = vadd.f32 %v2299_v9, %v2298_v7  ;;  %v2301_v12 = vpop.f32.mrb[22].mxu0 }
 0x833   :  { %v2302_v13 = vpop.f32.mrb[23].mxu0 }
 0x834   :  { %v1533_v14 = vadd.f32 %v2300_v10, %v2220_v4  ;;  %v2303_v19 = vadd.f32 %v2302_v13, %v2301_v12 }
 0x836   :  { %v1541_v20 = vmin.f32 %v1533_v14, 0.0  ;;  %v1536_v15 = vadd.f32 %v2303_v19, %v2220_v4  ;;  %vm1539_vm4 = vcmp.gt.f32.partialorder %v1533_v14, 0.0 }
 0x838   :  { %v1543_v21 = vmul.f32 1.442695, %v1541_v20  ;;  %v1542_v23 = vmin.f32 %v1536_v15, 0.0  ;;  %vm1540_vm5 = vcmp.gt.f32.partialorder %v1536_v15, 0.0 }
 0x83a   :  { %2505 = vpow2.f32 %v1543_v21  ;;  %v1545_v22 = vmul.f32 1.442695, %v1542_v23 }
 0x83c   :  { %2507 = vpow2.f32 %v1545_v22 }
 0x844   :  { %v2506_v24 = vpop.eup %2505 }
 0x845   :  { %v2221_v16 = vadd.f32 -1.0, %v2506_v24 }
 0x846   :  { %v2508_v25 = vpop.eup %2507 }
 0x847   :  { %v2222_v26 = vadd.f32 -1.0, %v2508_v25  ;;  %v3385_v27 = vsel %vm1539_vm4, %v1533_v14, %v2221_v16 }
 0x849   :  { %v3387_v28 = vsel %vm1540_vm5, %v1536_v15, %v2222_v26 }
 0x84a   :  { %v1551_v17 = vpack.c.bf16 %v3387_v28, %v3385_v27 }
 0x84b   :  { %2843 = dma.done.wait [#allocation10 + $0x2], 512 }
 0x84c   :  { %2844 = vsyncadd [#allocation10 + $0x2], 4294966784  ;;  %1596 = vmatprep.mubr.bf16.mxu1 %v2876_v8  ;;  %1639 = vmatprep.mubr.bf16.mxu0 %v2876_v8  ;;  %v1557_v29 = vld [vmem:[#allocation4 + $0x8] sm:$0xff]  ;;  %v1559_v30 = vld [vmem:[#allocation4 + $0x18] sm:$0xff]  ;;  %vm1560_vm6 = vcmask 130048  }
 0x84d   :  { %v1556_v31 = vld [vmem:[#allocation4] sm:$0xff]  ;;  %1564 = vmatprep.subr.bf16.mxu1 %v1557_v29  ;;  %1607 = vmatprep.subr.bf16.mxu0 %v1559_v30  ;;  %v1558_v32 = vld [vmem:[#allocation4 + $0x10] sm:$0xff]  ;;  %v1658_v53 = vld [vmem:[#allocation22] sm:$0xf] }
 0x84e   :  { %1565 = vmatpush1.bf16.msra.mxu1 %v1556_v31  ;;  %1608 = vmatpush1.bf16.msra.mxu0 %v1558_v32  ;;  %v1663_v58 = vrot.slane %v1658_v53, %v3245_v41  ;;  %v1671_v60 = vrot.slane %v1658_v53, %v1209_v55  ;;  %v1667_v8 = vrot.slane %v1658_v53, %v3251_v43 }
 0x84f   :  { %v1675_v33 = vrot.slane %v1658_v53, %v1213_v57 }
 0x851   :  { %2223 = vmatmul.mubr.msk.bf16.vlgmr.msra.gmra.mrb[4].mxu1 %vm1560_vm6, %v3225_v11  ;;  %2224 = vmatmul.mubr.msk.bf16.vlgmr.msra.gmra.mrb[16].mxu0 %vm1560_vm6, %v3225_v11 }
 0x924   :  { %v1598_v34 = vpop.f32.mrb[4].mxu1  ;;  %v1641_v35 = vpop.f32.mrb[16].mxu0 }
 0x925   :  { %v1680_v36 = vadd.f32 %v1663_v58, %v1598_v34  ;;  %v1682_v37 = vadd.f32 %v1671_v60, %v1641_v35  ;;  %v1600_v39 = vpop.f32.mrb[5].mxu1  ;;  %v1643_v38 = vpop.f32.mrb[17].mxu0 }
 0x926   :  { %v3401_v42 = vadd.f32 %v1667_v8, %v1600_v39  ;;  %v3403_v11 = vadd.f32 %v1675_v33, %v1643_v38  ;;  %v1602_v18 = vpop.f32.mrb[6].mxu1  ;;  %v1645_v44 = vpop.f32.mrb[18].mxu0 }
 0x927   :  { %v1696_v45 = vmin.f32 %v1680_v36, 0.0  ;;  %v1698_v46 = vmin.f32 %v1682_v37, 0.0  ;;  %v1604_v55 = vpop.f32.mrb[7].mxu1  ;;  %v1647_v47 = vpop.f32.mrb[19].mxu0  ;;  %v1684_v48 = vadd.f32 %v1663_v58, %v1602_v18  ;;  %v1686_v50 = vadd.f32 %v1671_v60, %v1645_v44 }
 0x928   :  { %v1697_v49 = vmin.f32 %v3401_v42, 0.0  ;;  %v1699_v40 = vmin.f32 %v3403_v11, 0.0  ;;  %v1685_v59 = vadd.f32 %v1667_v8, %v1604_v55  ;;  %v1687_v61 = vadd.f32 %v1675_v33, %v1647_v47 }
 0x929   :  { %v1704_v57 = vmul.f32 1.442695, %v1696_v45  ;;  %v1708_v51 = vmul.f32 1.442695, %v1698_v46  ;;  %v1700_v62 = vmin.f32 %v1684_v48, 0.0  ;;  %v1702_v63 = vmin.f32 %v1686_v50, 0.0 }
 0x92a   :  { %v1706_v54 = vmul.f32 1.442695, %v1697_v49  ;;  %v1710_v56 = vmul.f32 1.442695, %v1699_v40  ;;  %v1701_v0 = vmin.f32 %v1685_v59, 0.0  ;;  %v1703_v1 = vmin.f32 %v1687_v61, 0.0 }
 0x92b   :  { %2509 = vpow2.f32 %v1704_v57  ;;  %v1712_v52 = vmul.f32 1.442695, %v1700_v62  ;;  %v1716_v2 = vmul.f32 1.442695, %v1702_v63  ;;  %vm1688_vm7 = vcmp.gt.f32.partialorder %v1680_v36, 0.0 }
 0x92c   :  { %2511 = vpow2.f32 %v1708_v51  ;;  %v1714_v3 = vmul.f32 1.442695, %v1701_v0  ;;  %v1718_v5 = vmul.f32 1.442695, %v1703_v1  ;;  %vm1690_vm8 = vcmp.gt.f32.partialorder %v1682_v37, 0.0 }
 0x92d   :  { %2513 = vpow2.f32 %v1706_v54  ;;  %vm1689_vm9 = vcmp.gt.f32.partialorder %v3401_v42, 0.0  ;;  %vm1691_vm10 = vcmp.gt.f32.partialorder %v3403_v11, 0.0  ;;  %vm1692_vm11 = vcmp.gt.f32.partialorder %v1684_v48, 0.0 }
 0x92e   :  { %2515 = vpow2.f32 %v1710_v56  ;;  %vm1694_vm12 = vcmp.gt.f32.partialorder %v1686_v50, 0.0  ;;  %vm1693_vm13 = vcmp.gt.f32.partialorder %v1685_v59, 0.0  ;;  %vm1695_vm14 = vcmp.gt.f32.partialorder %v1687_v61, 0.0 }
 0x92f   :  { %2517 = vpow2.f32 %v1712_v52 }
 0x930   :  { %2519 = vpow2.f32 %v1716_v2 }
 0x931   :  { %2521 = vpow2.f32 %v1714_v3 }
 0x932   :  { %2523 = vpow2.f32 %v1718_v5 }
 0x935   :  { %v2510_v6 = vpop.eup %2509 }
 0x936   :  { %v2512_v7 = vpop.eup %2511  ;;  %v2225_v10 = vadd.f32 -1.0, %v2510_v6 }
 0x937   :  { %v2514_v4 = vpop.eup %2513  ;;  %v2227_v13 = vadd.f32 -1.0, %v2512_v7 }
 0x938   :  { %v2516_v9 = vpop.eup %2515  ;;  %v2226_v19 = vadd.f32 -1.0, %v2514_v4  ;;  %v3409_v24 = vsel %vm1688_vm7, %v1680_v36, %v2225_v10 }
 0x939   :  { %v2518_v12 = vpop.eup %2517  ;;  %v2228_v21 = vadd.f32 -1.0, %v2516_v9  ;;  %v3414_v26 = vsel %vm1690_vm8, %v1682_v37, %v2227_v13 }
 0x93a   :  { %v2520_v14 = vpop.eup %2519  ;;  %v2229_v20 = vadd.f32 -1.0, %v2518_v12  ;;  %v1729_v32 = vsel %vm1689_vm9, %v3401_v42, %v2226_v19 }
 0x93b   :  { %v2522_v15 = vpop.eup %2521  ;;  %v2231_v23 = vadd.f32 -1.0, %v2520_v14  ;;  %v3428_v60 = vsel %vm1691_vm10, %v3403_v11, %v2228_v21 }
 0x93c   :  { %v2524_v22 = vpop.eup %2523  ;;  %v3411_v16 = vsel %vm1692_vm11, %v1684_v48, %v2229_v20  ;;  %v2230_v25 = vadd.f32 -1.0, %v2522_v15 }
 0x93d   :  { %v1736_v29 = vpack.c.bf16 %v3411_v16, %v3409_v24  ;;  %v3418_v30 = vsel %vm1694_vm12, %v1686_v50, %v2231_v23  ;;  %v2232_v31 = vadd.f32 -1.0, %v2524_v22 }
 0x93e   :  { %v1738_v53 = vpack.c.bf16 %v3418_v30, %v3414_v26  ;;  %v1733_v58 = vsel %vm1693_vm13, %v1685_v59, %v2230_v25 }
 0x93f   :  { %v1737_v8 = vpack.c.bf16 %v1733_v58, %v1729_v32  ;;  %v3430_v33 = vsel %vm1695_vm14, %v1687_v61, %v2232_v31 }
 0x940   :  { %v1739_v34 = vpack.c.bf16 %v3430_v33, %v3428_v60 }
 0x941   :  { %2845 = dma.done.wait [#allocation10 + $0x5], 8192 }
 0x942   :  { %2846 = vsyncadd [#allocation10 + $0x5], 4294959104  ;;  %1850 = vmatprep.mubr.bf16.mxu0 %v1737_v8  ;;  %v1743_v35 = vld [vmem:[#allocation7 + $0x8] sm:$0xff]  ;;  %v1742_v36 = vld [vmem:[#allocation7] sm:$0xff] }
 0x943   :  { %v1745_v37 = vld [vmem:[#allocation7 + $0x18] sm:$0xff]  ;;  %1818 = vmatprep.subr.bf16.mxu0 %v1743_v35  ;;  %v1744_v39 = vld [vmem:[#allocation7 + $0x10] sm:$0xff]  ;;  %v1747_v38 = vld [vmem:[#allocation7 + $0x28] sm:$0xff] }
 0x944   :  { %1819 = vmatpush1.bf16.msra.mxu0 %v1742_v36  ;;  %v1746_v42 = vld [vmem:[#allocation7 + $0x20] sm:$0xff]  ;;  %v1749_v11 = vld [vmem:[#allocation7 + $0x38] sm:$0xff]  ;;  %v1748_v18 = vld [vmem:[#allocation7 + $0x30] sm:$0xff] }
 0x945   :  { %1820 = vmatprep.subr.bf16.mxu0 %v1745_v37  ;;  %v1751_v44 = vld [vmem:[#allocation7 + $0x48] sm:$0xff]  ;;  %v1750_v45 = vld [vmem:[#allocation7 + $0x40] sm:$0xff]  ;;  %v1753_v46 = vld [vmem:[#allocation7 + $0x58] sm:$0xff] }
 0x946   :  { %v1752_v55 = vld [vmem:[#allocation7 + $0x50] sm:$0xff]  ;;  %v1755_v47 = vld [vmem:[#allocation7 + $0x68] sm:$0xff]  ;;  %v1754_v49 = vld [vmem:[#allocation7 + $0x60] sm:$0xff] }
 0x947   :  { %v1757_v40 = vld [vmem:[#allocation7 + $0x78] sm:$0xff]  ;;  %v1756_v57 = vld [vmem:[#allocation7 + $0x70] sm:$0xff]  ;;  %v1759_v51 = vld [vmem:[#allocation7 + $0x88] sm:$0xff] }
 0x948   :  { %1821 = vmatpush1.bf16.msra.mxu0 %v1744_v39  ;;  %v1758_v48 = vld [vmem:[#allocation7 + $0x80] sm:$0xff]  ;;  %v1761_v50 = vld [vmem:[#allocation7 + $0x98] sm:$0xff]  ;;  %v1760_v54 = vld [vmem:[#allocation7 + $0x90] sm:$0xff] }
 0x949   :  { %1822 = vmatprep.subr.bf16.mxu0 %v1747_v38  ;;  %v1763_v56 = vld [vmem:[#allocation7 + $0xa8] sm:$0xff]  ;;  %v1762_v59 = vld [vmem:[#allocation7 + $0xa0] sm:$0xff]  ;;  %v1765_v61 = vld [vmem:[#allocation7 + $0xb8] sm:$0xff] }
 0x94a   :  { %v1764_v62 = vld [vmem:[#allocation7 + $0xb0] sm:$0xff]  ;;  %v1767_v63 = vld [vmem:[#allocation7 + $0xc8] sm:$0xff]  ;;  %v1766_v0 = vld [vmem:[#allocation7 + $0xc0] sm:$0xff] }
 0x94b   :  { %v1769_v52 = vld [vmem:[#allocation7 + $0xd8] sm:$0xff]  ;;  %v1768_v1 = vld [vmem:[#allocation7 + $0xd0] sm:$0xff]  ;;  %v1771_v2 = vld [vmem:[#allocation7 + $0xe8] sm:$0xff] }
 0x94c   :  { %1823 = vmatpush1.bf16.msra.mxu0 %v1746_v42  ;;  %v1770_v3 = vld [vmem:[#allocation7 + $0xe0] sm:$0xff]  ;;  %v1773_v5 = vld [vmem:[#allocation7 + $0xf8] sm:$0xff]  ;;  %v1772_v6 = vld [vmem:[#allocation7 + $0xf0] sm:$0xff] }
 0x94d   :  { %1824 = vmatprep.subr.bf16.mxu0 %v1749_v11  ;;  %v1775_v7 = vld [vmem:[#allocation7 + $0x108] sm:$0xff]  ;;  %v1774_v4 = vld [vmem:[#allocation7 + $0x100] sm:$0xff]  ;;  %v1777_v9 = vld [vmem:[#allocation7 + $0x118] sm:$0xff] }
 0x94e   :  { %v1776_v10 = vld [vmem:[#allocation7 + $0x110] sm:$0xff]  ;;  %v1779_v12 = vld [vmem:[#allocation7 + $0x128] sm:$0xff]  ;;  %v1778_v13 = vld [vmem:[#allocation7 + $0x120] sm:$0xff] }
 0x94f   :  { %v1781_v14 = vld [vmem:[#allocation7 + $0x138] sm:$0xff]  ;;  %v1780_v19 = vld [vmem:[#allocation7 + $0x130] sm:$0xff]  ;;  %v1783_v20 = vld [vmem:[#allocation7 + $0x148] sm:$0xff] }
 0x950   :  { %1825 = vmatpush1.bf16.msra.mxu0 %v1748_v18  ;;  %v1782_v15 = vld [vmem:[#allocation7 + $0x140] sm:$0xff]  ;;  %v1785_v21 = vld [vmem:[#allocation7 + $0x158] sm:$0xff]  ;;  %v1784_v23 = vld [vmem:[#allocation7 + $0x150] sm:$0xff] }
 0x951   :  { %1826 = vmatprep.subr.bf16.mxu0 %v1751_v44  ;;  %v1787_v22 = vld [vmem:[#allocation7 + $0x168] sm:$0xff]  ;;  %v1786_v24 = vld [vmem:[#allocation7 + $0x160] sm:$0xff]  ;;  %v1789_v16 = vld [vmem:[#allocation7 + $0x178] sm:$0xff] }
 0x952   :  { %v1788_v25 = vld [vmem:[#allocation7 + $0x170] sm:$0xff]  ;;  %v1790_v31 = vld [vmem:[#allocation7 + $0x180] sm:$0xff]  ;;  %v1793_v32 = vld [vmem:[#allocation7 + $0x198] sm:$0xff] }
 0x953   :  { %v1792_v58 = vld [vmem:[#allocation7 + $0x190] sm:$0xff]  ;;  %v1795_v60 = vld [vmem:[#allocation7 + $0x1a8] sm:$0xff]  ;;  %v1794_v8 = vld [vmem:[#allocation7 + $0x1a0] sm:$0xff] }
 0x954   :  { %1827 = vmatpush1.bf16.msra.mxu0 %v1750_v45  ;;  %v1797_v33 = vld [vmem:[#allocation7 + $0x1b8] sm:$0xff]  ;;  %v1799_v35 = vld [vmem:[#allocation7 + $0x1c8] sm:$0xff]  ;;  %v1798_v36 = vld [vmem:[#allocation7 + $0x1c0] sm:$0xff] }
 0x955   :  { %1828 = vmatprep.subr.bf16.mxu0 %v1753_v46  ;;  %v1801_v37 = vld [vmem:[#allocation7 + $0x1d8] sm:$0xff]  ;;  %v1800_v39 = vld [vmem:[#allocation7 + $0x1d0] sm:$0xff]  ;;  %v1803_v38 = vld [vmem:[#allocation7 + $0x1e8] sm:$0xff] }
 0x956   :  { %v1802_v42 = vld [vmem:[#allocation7 + $0x1e0] sm:$0xff]  ;;  %v1805_v11 = vld [vmem:[#allocation7 + $0x1f8] sm:$0xff]  ;;  %v1804_v18 = vld [vmem:[#allocation7 + $0x1f0] sm:$0xff] }
 0x957   :  { %v1806_v44 = vld [vmem:[#allocation24] sm:$0x3] }
 0x958   :  { %1829 = vmatpush1.bf16.msra.mxu0 %v1752_v55  ;;  %v1811_v45 = vrot.slane %v1806_v44, %v3245_v41  ;;  %v1815_v46 = vrot.slane %v1806_v44, %v3251_v43 }
 0x959   :  { %1830 = vmatprep.subr.bf16.mxu0 %v1755_v47 }
 0x95c   :  { %1831 = vmatpush1.bf16.msra.mxu0 %v1754_v49 }
 0x95d   :  { %1832 = vmatprep.subr.bf16.mxu0 %v1757_v40 }
 0x960   :  { %1833 = vmatpush1.bf16.msra.mxu0 %v1756_v57 }
 0x961   :  { %1834 = vmatprep.subr.bf16.mxu0 %v1759_v51 }
 0x964   :  { %1835 = vmatpush1.bf16.msra.mxu0 %v1758_v48 }
 0x965   :  { %1836 = vmatprep.subr.bf16.mxu0 %v1761_v50 }
 0x968   :  { %1837 = vmatpush1.bf16.msra.mxu0 %v1760_v54 }
 0x969   :  { %1838 = vmatprep.subr.bf16.mxu0 %v1763_v56 }
 0x96c   :  { %1839 = vmatpush1.bf16.msra.mxu0 %v1762_v59 }
 0x96d   :  { %1840 = vmatprep.subr.bf16.mxu0 %v1765_v61 }
 0x970   :  { %1841 = vmatpush1.bf16.msra.mxu0 %v1764_v62 }
 0x971   :  { %1842 = vmatprep.subr.bf16.mxu0 %v1767_v63 }
 0x974   :  { %1843 = vmatpush1.bf16.msra.mxu0 %v1766_v0 }
 0x975   :  { %1844 = vmatprep.subr.bf16.mxu0 %v1769_v52 }
 0x978   :  { %1845 = vmatpush1.bf16.msra.mxu0 %v1768_v1 }
 0x979   :  { %1846 = vmatprep.subr.bf16.mxu0 %v1771_v2 }
 0x97c   :  { %1847 = vmatpush1.bf16.msra.mxu0 %v1770_v3 }
 0x97d   :  { %1848 = vmatprep.subr.bf16.mxu0 %v1773_v5 }
 0x980   :  { %1849 = vmatpush1.bf16.msra.mxu0 %v1772_v6 }
 0x981   :  { %1861 = vmatprep.subr.bf16.mxu0 %v1775_v7 }
 0x983   :  { %1851 = vmatmul.mubr.bf16.vlgmr.msra.gmra.mrb[24].mxu0 %v1736_v29  ;;  %v1791_v29 = vld [vmem:[#allocation7 + $0x188] sm:$0xff] }
 0x984   :  { %1862 = vmatpush1.bf16.msra.mxu0 %v1774_v4  ;;  %1893 = vmatprep.mubr.bf16.mxu0 %v1739_v34  ;;  %v1796_v34 = vld [vmem:[#allocation7 + $0x1b0] sm:$0xff] }
 0x985   :  { %1863 = vmatprep.subr.bf16.mxu0 %v1777_v9 }
 0x988   :  { %1864 = vmatpush1.bf16.msra.mxu0 %v1776_v10 }
 0x989   :  { %1865 = vmatprep.subr.bf16.mxu0 %v1779_v12 }
 0x98c   :  { %1866 = vmatpush1.bf16.msra.mxu0 %v1778_v13 }
 0x98d   :  { %1867 = vmatprep.subr.bf16.mxu0 %v1781_v14 }
 0x990   :  { %1868 = vmatpush1.bf16.msra.mxu0 %v1780_v19 }
 0x991   :  { %1869 = vmatprep.subr.bf16.mxu0 %v1783_v20 }
 0x994   :  { %1870 = vmatpush1.bf16.msra.mxu0 %v1782_v15 }
 0x995   :  { %1871 = vmatprep.subr.bf16.mxu0 %v1785_v21 }
 0x998   :  { %1872 = vmatpush1.bf16.msra.mxu0 %v1784_v23 }
 0x999   :  { %1873 = vmatprep.subr.bf16.mxu0 %v1787_v22 }
 0x99c   :  { %1874 = vmatpush1.bf16.msra.mxu0 %v1786_v24 }
 0x99d   :  { %1875 = vmatprep.subr.bf16.mxu0 %v1789_v16 }
 0x9a0   :  { %1876 = vmatpush1.bf16.msra.mxu0 %v1788_v25 }
 0x9a1   :  { %1877 = vmatprep.subr.bf16.mxu0 %v1791_v29 }
 0x9a4   :  { %1878 = vmatpush1.bf16.msra.mxu0 %v1790_v31 }
 0x9a5   :  { %1879 = vmatprep.subr.bf16.mxu0 %v1793_v32 }
 0x9a8   :  { %1880 = vmatpush1.bf16.msra.mxu0 %v1792_v58 }
 0x9a9   :  { %1881 = vmatprep.subr.bf16.mxu0 %v1795_v60 }
 0x9ac   :  { %1882 = vmatpush1.bf16.msra.mxu0 %v1794_v8 }
 0x9ad   :  { %1883 = vmatprep.subr.bf16.mxu0 %v1797_v33 }
 0x9b0   :  { %1884 = vmatpush1.bf16.msra.mxu0 %v1796_v34 }
 0x9b1   :  { %1885 = vmatprep.subr.bf16.mxu0 %v1799_v35 }
 0x9b4   :  { %1886 = vmatpush1.bf16.msra.mxu0 %v1798_v36 }
 0x9b5   :  { %1887 = vmatprep.subr.bf16.mxu0 %v1801_v37 }
 0x9b8   :  { %1888 = vmatpush1.bf16.msra.mxu0 %v1800_v39 }
 0x9b9   :  { %1889 = vmatprep.subr.bf16.mxu0 %v1803_v38 }
 0x9bc   :  { %1890 = vmatpush1.bf16.msra.mxu0 %v1802_v42 }
 0x9bd   :  { %1891 = vmatprep.subr.bf16.mxu0 %v1805_v11 }
 0x9c0   :  { %1892 = vmatpush1.bf16.msra.mxu0 %v1804_v18 }
 0x9c3   :  { %1894 = vmatmul.mubr.bf16.vlgmr.msra.gmra.mrb[24].mxu0 %v1738_v53 }
 0xa96   :  { %v1895_v55 = vpop.f32.mrb[24].mxu0 }
 0xa97   :  { %v2376_v47 = vadd.f32 %v1895_v55, %v1811_v45  ;;  %v1897_v49 = vpop.f32.mrb[25].mxu0 }
 0xa98   :  { %v2377_v40 = vadd.f32 %v1897_v49, %v1815_v46  ;;  %v1899_v57 = vpop.f32.mrb[26].mxu0 }
 0xa99   :  { %v1908_v51 = vmin.f32 %v2376_v47, 0.0  ;;  %v2378_v48 = vadd.f32 %v1899_v57, %v1811_v45  ;;  %v1901_v50 = vpop.f32.mrb[27].mxu0  ;;  %vm1904_vm15 = vcmp.gt.f32.partialorder %v2376_v47, 0.0 }
 0xa9a   :  { %v1909_v54 = vmin.f32 %v2377_v40, 0.0  ;;  %v2379_v56 = vadd.f32 %v1901_v50, %v1815_v46  ;;  %vm1905_vm1 = vcmp.gt.f32.partialorder %v2377_v40, 0.0 }
 0xa9b   :  { %v1912_v59 = vmul.f32 1.442695, %v1908_v51  ;;  %v1910_v61 = vmin.f32 %v2378_v48, 0.0  ;;  %vm1906_vm0 = vcmp.gt.f32.partialorder %v2378_v48, 0.0 }
 0xa9c   :  { %v1914_v62 = vmul.f32 1.442695, %v1909_v54  ;;  %v1911_v26 = vmin.f32 %v2379_v56, 0.0  ;;  %vm1907_vm2 = vcmp.gt.f32.partialorder %v2379_v56, 0.0 }
 0xa9d   :  { %2525 = vpow2.f32 %v1912_v59  ;;  %v1916_v30 = vmul.f32 1.442695, %v1910_v61 }
 0xa9e   :  { %2527 = vpow2.f32 %v1914_v62  ;;  %v1918_v41 = vmul.f32 1.442695, %v1911_v26 }
 0xa9f   :  { %2529 = vpow2.f32 %v1916_v30 }
 0xaa0   :  { %2531 = vpow2.f32 %v1918_v41 }
 0xaa7   :  { %v2526_v43 = vpop.eup %2525 }
 0xaa8   :  { %v2528_v53 = vpop.eup %2527  ;;  %v2233_v63 = vadd.f32 -1.0, %v2526_v43 }
 0xaa9   :  { %v2530_v0 = vpop.eup %2529  ;;  %v2234_v52 = vadd.f32 -1.0, %v2528_v53 }
 0xaaa   :  { %v2532_v1 = vpop.eup %2531  ;;  %v2235_v2 = vadd.f32 -1.0, %v2530_v0  ;;  %v1924_v5 = vsel %vm1904_vm15, %v2376_v47, %v2233_v63 }
 0xaab   :  { %v2236_v3 = vadd.f32 -1.0, %v2532_v1  ;;  %v1925_v7 = vsel %vm1905_vm1, %v2377_v40, %v2234_v52 }
 0xaac   :  { %v1926_v6 = vsel %vm1906_vm0, %v2378_v48, %v2235_v2 }
 0xaad   :  { %v1928_v4 = vpack.c.bf16 %v1926_v6, %v1924_v5  ;;  %v1927_v9 = vsel %vm1907_vm2, %v2379_v56, %v2236_v3 }
 0xaae   :  { %v1929_v10 = vpack.c.bf16 %v1927_v9, %v1925_v7 }
 0xaaf   :  { %2847 = dma.done.wait [#allocation10 + $0x6], 2048 }
 0xab0   :  { %2848 = vsyncadd [#allocation10 + $0x6], 4294965248  ;;  %1987 = vmatprep.mubr.bf16.mxu1 %v1929_v10  ;;  %v1940_v12 = vld [vmem:[#allocation8 + $0x40] sm:$0xff]  ;;  %v1941_v14 = vld [vmem:[#allocation8 + $0x48] sm:$0xff] }
 0xab1   :  { %v1932_v13 = vld [vmem:[#allocation8] sm:$0xff]  ;;  %2304 = vmatprep.subr.bf16.mxu1 %v1940_v12  ;;  %v1933_v19 = vld [vmem:[#allocation8 + $0x8] sm:$0xff]  ;;  %v1942_v20 = vld [vmem:[#allocation8 + $0x50] sm:$0xff] }
 0xab2   :  { %2305 = vmatpush3.bf16.msra.mxu1 %v1932_v13  ;;  %v1934_v15 = vld [vmem:[#allocation8 + $0x10] sm:$0xff]  ;;  %v1943_v21 = vld [vmem:[#allocation8 + $0x58] sm:$0xff]  ;;  %v1944_v22 = vld [vmem:[#allocation8 + $0x60] sm:$0xff] }
 0xab3   :  { %2306 = vmatprep.subr.bf16.mxu1 %v1941_v14  ;;  %v1935_v23 = vld [vmem:[#allocation8 + $0x18] sm:$0xff]  ;;  %v1936_v24 = vld [vmem:[#allocation8 + $0x20] sm:$0xff]  ;;  %v1945_v16 = vld [vmem:[#allocation8 + $0x68] sm:$0xff] }
 0xab4   :  { %v1937_v25 = vld [vmem:[#allocation8 + $0x28] sm:$0xff]  ;;  %v1946_v29 = vld [vmem:[#allocation8 + $0x70] sm:$0xff]  ;;  %v1947_v32 = vld [vmem:[#allocation8 + $0x78] sm:$0xff] }
 0xab5   :  { %v1938_v31 = vld [vmem:[#allocation8 + $0x30] sm:$0xff]  ;;  %v1939_v58 = vld [vmem:[#allocation8 + $0x38] sm:$0xff]  ;;  %v2237_v8 = vld [vmem:[#allocation25] ss:$0 sm:$0xff] }
 0xab6   :  { %2307 = vmatpush3.bf16.msra.mxu1 %v1933_v19 }
 0xab7   :  { %2308 = vmatprep.subr.bf16.mxu1 %v1942_v20 }
 0xaba   :  { %2309 = vmatpush3.bf16.msra.mxu1 %v1934_v15 }
 0xabb   :  { %2310 = vmatprep.subr.bf16.mxu1 %v1943_v21 }
 0xabe   :  { %2311 = vmatpush3.bf16.msra.mxu1 %v1935_v23 }
 0xabf   :  { %2312 = vmatprep.subr.bf16.mxu1 %v1944_v22 }
 0xac2   :  { %2313 = vmatpush3.bf16.msra.mxu1 %v1936_v24 }
 0xac3   :  { %2314 = vmatprep.subr.bf16.mxu1 %v1945_v16 }
 0xac6   :  { %2315 = vmatpush3.bf16.msra.mxu1 %v1937_v25 }
 0xac7   :  { %2316 = vmatprep.subr.bf16.mxu1 %v1946_v29 }
 0xaca   :  { %2317 = vmatpush3.bf16.msra.mxu1 %v1938_v31 }
 0xacb   :  { %2318 = vmatprep.subr.bf16.mxu1 %v1947_v32 }
 0xace   :  { %2319 = vmatpush3.bf16.msra.mxu1 %v1939_v58 }
 0xad1   :  { %1988 = vmatmul.mubr.bf16.vlgmr.msra.gmra.mrb[16].mxu1 %v1928_v4 }
 0xba4   :  { %v2320_v60 = vpop.f32.mrb[16].mxu1 }
 0xba5   :  { %v2321_v33 = vpop.f32.mrb[17].mxu1 }
 0xba6   :  { %v2322_v34 = vadd.f32 %v2321_v33, %v2320_v60  ;;  %v2323_v35 = vpop.f32.mrb[18].mxu1 }
 0xba7   :  { %v2324_v36 = vpop.f32.mrb[19].mxu1 }
 0xba8   :  { %v1990_v37 = vadd.f32 %v2322_v34, %v2237_v8  ;;  %v2325_v39 = vadd.f32 %v2324_v36, %v2323_v35 }
 0xbaa   :  { %v1998_v38 = vmin.f32 %v1990_v37, 0.0  ;;  %v1993_v42 = vadd.f32 %v2325_v39, %v2237_v8  ;;  %vm1996_vm3 = vcmp.gt.f32.partialorder %v1990_v37, 0.0 }
 0xbac   :  { %v2000_v11 = vmul.f32 1.442695, %v1998_v38  ;;  %v1999_v18 = vmin.f32 %v1993_v42, 0.0  ;;  %vm1997_vm4 = vcmp.gt.f32.partialorder %v1993_v42, 0.0 }
 0xbae   :  { %2533 = vpow2.f32 %v2000_v11  ;;  %v2002_v44 = vmul.f32 1.442695, %v1999_v18 }
 0xbb0   :  { %2535 = vpow2.f32 %v2002_v44 }
 0xbb8   :  { %v2534_v45 = vpop.eup %2533 }
 0xbb9   :  { %v2238_v46 = vadd.f32 -1.0, %v2534_v45 }
 0xbba   :  { %v2536_v55 = vpop.eup %2535 }
 0xbbb   :  { %v2239_v47 = vadd.f32 -1.0, %v2536_v55  ;;  %v2006_v49 = vsel %vm1996_vm3, %v1990_v37, %v2238_v46 }
 0xbbd   :  { %v2007_v40 = vsel %vm1997_vm4, %v1993_v42, %v2239_v47 }
 0xbbe   :  { %v2008_v57 = vpack.c.bf16 %v2007_v40, %v2006_v49 }
 0xbbf   :  { %2849 = dma.done.wait [#allocation10 + $0x7], 2048 }
 0xbc0   :  { %2850 = vsyncadd [#allocation10 + $0x7], 4294965248  ;;  %2066 = vmatprep.mubr.bf16.mxu1 %v2008_v57  ;;  %v2019_v51 = vld [vmem:[#allocation9 + $0x40] sm:$0xff]  ;;  %v2020_v50 = vld [vmem:[#allocation9 + $0x48] sm:$0xff]  ;;  %s3511_s2 = sld [smem:[#allocation66_spill]] }
 0xbc1   :  { %v2011_v48 = vld [vmem:[#allocation9] sm:$0xff]  ;;  %2326 = vmatprep.subr.bf16.mxu1 %v2019_v51  ;;  %v2012_v54 = vld [vmem:[#allocation9 + $0x8] sm:$0xff]  ;;  %v2021_v56 = vld [vmem:[#allocation9 + $0x50] sm:$0xff] }
 0xbc2   :  { %2327 = vmatpush3.bf16.msra.mxu1 %v2011_v48  ;;  %v2013_v59 = vld [vmem:[#allocation9 + $0x10] sm:$0xff]  ;;  %v2022_v61 = vld [vmem:[#allocation9 + $0x58] sm:$0xff]  ;;  %v2023_v26 = vld [vmem:[#allocation9 + $0x60] sm:$0xff] }
 0xbc3   :  { %2328 = vmatprep.subr.bf16.mxu1 %v2020_v50  ;;  %v2014_v62 = vld [vmem:[#allocation9 + $0x18] sm:$0xff]  ;;  %v2015_v30 = vld [vmem:[#allocation9 + $0x20] sm:$0xff]  ;;  %v2024_v41 = vld [vmem:[#allocation9 + $0x68] sm:$0xff] }
 0xbc4   :  { %v2016_v43 = vld [vmem:[#allocation9 + $0x28] sm:$0xff]  ;;  %v2025_v53 = vld [vmem:[#allocation9 + $0x70] sm:$0xff]  ;;  %v2026_v0 = vld [vmem:[#allocation9 + $0x78] sm:$0xff] }
 0xbc5   :  { %v2017_v63 = vld [vmem:[#allocation9 + $0x30] sm:$0xff]  ;;  %v2018_v52 = vld [vmem:[#allocation9 + $0x38] sm:$0xff] }
 0xbc6   :  { %2329 = vmatpush3.bf16.msra.mxu1 %v2012_v54  ;;  %v2240_v2 = vld [vmem:[%s3511_s2] ss:$0 sm:$0xff] }
 0xbc7   :  { %2330 = vmatprep.subr.bf16.mxu1 %v2021_v56 }
 0xbca   :  { %2331 = vmatpush3.bf16.msra.mxu1 %v2013_v59 }
 0xbcb   :  { %2332 = vmatprep.subr.bf16.mxu1 %v2022_v61 }
 0xbce   :  { %2333 = vmatpush3.bf16.msra.mxu1 %v2014_v62 }
 0xbcf   :  { %2334 = vmatprep.subr.bf16.mxu1 %v2023_v26 }
 0xbd2   :  { %2335 = vmatpush3.bf16.msra.mxu1 %v2015_v30 }
 0xbd3   :  { %2336 = vmatprep.subr.bf16.mxu1 %v2024_v41 }
 0xbd6   :  { %2337 = vmatpush3.bf16.msra.mxu1 %v2016_v43 }
 0xbd7   :  { %2338 = vmatprep.subr.bf16.mxu1 %v2025_v53 }
 0xbda   :  { %2339 = vmatpush3.bf16.msra.mxu1 %v2017_v63 }
 0xbdb   :  { %2340 = vmatprep.subr.bf16.mxu1 %v2026_v0 }
 0xbde   :  { %2341 = vmatpush3.bf16.msra.mxu1 %v2018_v52 }
 0xbe1   :  { %2067 = vmatmul.mubr.bf16.vlgmr.msra.gmra.mrb[20].mxu1 %v1551_v17 }
 0xcb4   :  { %v2342_v1 = vpop.f32.mrb[20].mxu1 }
 0xcb5   :  { %v2343_v3 = vpop.f32.mrb[21].mxu1 }
 0xcb6   :  { %v2344_v5 = vadd.f32 %v2343_v3, %v2342_v1  ;;  %v2345_v6 = vpop.f32.mrb[22].mxu1 }
 0xcb7   :  { %v2346_v7 = vpop.f32.mrb[23].mxu1 }
 0xcb8   :  { %v2069_v4 = vadd.f32 %v2344_v5, %v2240_v2  ;;  %v2347_v9 = vadd.f32 %v2346_v7, %v2345_v6 }
 0xcba   :  { %2241 = vst [vmem:[%s3510_s11 + $0x10] sm:$0xff] %v2069_v4  ;;  %v2072_v10 = vadd.f32 %v2347_v9, %v2240_v2 }
 0xcbc   :  { %2242 = vst [vmem:[%s3510_s11 + $0x18] sm:$0xff] %v2072_v10 }
 0xcbd   :  { %2082 = vsyncpa [#allocation12], 1 }
 0xcbe   :  { %2083 = vsyncpa [#allocation14], 1 }
 0xcbf   :  { %2084 = vsyncpa [#allocation17], 1 }
 0xcc0   :  { %2085 = vsyncpa [#allocation20], 1 }
 0xcc1   :  { %2086 = vsyncpa [#allocation23], 1 }
 0xcc2   :  { %2087 = vsyncpa [#allocation26], 1 }
 0xcc3   :  { %2088 = vsyncmov [#allocation10] }
 0xcc6   :  { %s2089_s20 = vpop.sfrf %2088 }
 0xcc7   :  { %p2243_p6 = scmp.ne.s32.totalorder %s2089_s20, 0 }
 0xcc9   :  { %2093 = shalt.err (%p2243_p6)  }
 0xcca   :  { %2095 = vsyncmov [#allocation10 + $0x1] }
 0xccd   :  { %s2096_s10 = vpop.sfrf %2095 }
 0xcce   :  { %p2244_p7 = scmp.ne.s32.totalorder %s2096_s10, 0 }
 0xcd0   :  { %2100 = shalt.err (%p2244_p7)  }
 0xcd1   :  { %2102 = vsyncmov [#allocation10 + $0x2] }
 0xcd4   :  { %s2103_s17 = vpop.sfrf %2102 }
 0xcd5   :  { %p2245_p8 = scmp.ne.s32.totalorder %s2103_s17, 0 }
 0xcd7   :  { %2107 = shalt.err (%p2245_p8)  }
 0xcd8   :  { %2109 = vsyncmov [#allocation10 + $0x3] }
 0xcdb   :  { %s2110_s7 = vpop.sfrf %2109 }
 0xcdc   :  { %p2246_p9 = scmp.ne.s32.totalorder %s2110_s7, 0 }
 0xcde   :  { %2114 = shalt.err (%p2246_p9)  }
 0xcdf   :  { %2116 = vsyncmov [#allocation10 + $0x4] }
 0xce2   :  { %s2117_s22 = vpop.sfrf %2116 }
 0xce3   :  { %p2247_p10 = scmp.ne.s32.totalorder %s2117_s22, 0 }
 0xce5   :  { %2121 = shalt.err (%p2247_p10)  }
 0xce6   :  { %2123 = vsyncmov [#allocation10 + $0x5] }
 0xce9   :  { %s2124_s12 = vpop.sfrf %2123 }
 0xcea   :  { %p2248_p11 = scmp.ne.s32.totalorder %s2124_s12, 0 }
 0xcec   :  { %2128 = shalt.err (%p2248_p11)  }
 0xced   :  { %2130 = vsyncmov [#allocation10 + $0x6] }
 0xcf0   :  { %s2131_s23 = vpop.sfrf %2130 }
 0xcf1   :  { %p2249_p12 = scmp.ne.s32.totalorder %s2131_s23, 0 }
 0xcf3   :  { %2135 = shalt.err (%p2249_p12)  }
 0xcf4   :  { %2137 = vsyncmov [#allocation10 + $0x7] }
 0xcf7   :  { %s2138_s6 = vpop.sfrf %2137 }
 0xcf8   :  { %p2250_p13 = scmp.ne.s32.totalorder %s2138_s6, 0 }
 0xcfa   :  { %2142 = shalt.err (%p2250_p13)  }

</bundles_post_ra>
